<compile_context>
chip_gen: v7x
topology: tpu7x:2x2x1
jax: 0.10.0
libtpu: 0.0.40
codegen_flags: <defaults>
</compile_context>

<pallas_src>
import functools

import jax
import jax.numpy as jnp
import numpy as np
from jax.experimental import pallas as pl
from jax.experimental.pallas import tpu as pltpu

KH = KW = 3      # conv kernel size, padding=1, stride=1
LANES = 128      # TPU lane width: matmul output dims are padded to this


def _round_up(n, m):
    return -(-n // m) * m


def backbone_kernel(x_ref, cw_ref, fw_ref, fb_ref, o_ref):
    """One image per grid step: im2col conv3x3 + ReLU + global-avg-pool + fc.

    x_ref : (1, H+2, W+2, Cin)      zero-padded NHWC input, f32
    cw_ref: (KH*KW*Cin + 1, Cp)     im2col conv weight (+ bias row), bf16,
                                    Cout zero-padded to Cp = 128 lanes
    fw_ref: (Cp, NCp)               fc weight, bf16, padded to 128 lanes
    fb_ref: (1, NCp)                fc bias, f32, padded
    o_ref : (1, 1, NCp)             logits (lane-dense, unmasked stores)
    """
    _, Hp, Wp, Cin = x_ref.shape
    H, W = Hp - 2, Wp - 2               # kernel hard-codes pad=1, stride=1

    x = x_ref[0].astype(jnp.float32)    # (Hp, Wp, Cin)

    # im2col: build one (H*W, 9*Cin + 1) patch matrix so the MXU sees a single
    # matmul instead of 9 tiny K=Cin dots.  The trailing ones column folds the
    # conv bias into the weight matrix.
    cols = []
    for dy in range(KH):
        for dx in range(KW):
            cols.append(x[dy:dy + H, dx:dx + W, :].reshape(H * W, Cin))
    cols.append(jnp.ones((H * W, 1), jnp.float32))
    patch = jnp.concatenate(cols, axis=-1)                    # (H*W, 9*Cin+1)

    # bf16 MXU operands, f32 accumulation.
    acc = jnp.dot(patch.astype(jnp.bfloat16), cw_ref[...],
                  preferred_element_type=jnp.float32)         # (H*W, Cp)
    acc = jnp.maximum(acc, 0.0)                               # ReLU (f32 VPU)

    # Global average pool over this image's spatial positions.
    feat = jnp.sum(acc, axis=0, keepdims=True) * (1.0 / (H * W))   # (1, Cp)

    # Classifier.
    logits = jnp.dot(feat.astype(jnp.bfloat16), fw_ref[...],
                     preferred_element_type=jnp.float32)      # (1, NCp)
    logits = logits + fb_ref[...]

    o_ref[0] = logits.astype(o_ref.dtype)


def prepare_params(conv_w, conv_b, fc_w, fc_b):
    """One-time (model-load) weight prep: im2col-flatten, fold conv bias,
    zero-pad output dims to 128 lanes, cast MXU operands to bf16."""
    kh, kw, cin, cout = conv_w.shape
    nc = fc_w.shape[1]
    cp = _round_up(max(cout, 1), LANES)
    ncp = _round_up(max(nc, 1), LANES)

    w_flat = conv_w.reshape(kh * kw * cin, cout).astype(jnp.float32)
    w_aug = jnp.concatenate(
        [w_flat, conv_b.reshape(1, cout).astype(jnp.float32)], axis=0)
    cw = jnp.zeros((kh * kw * cin + 1, cp), jnp.bfloat16)
    cw = cw.at[:, :cout].set(w_aug.astype(jnp.bfloat16))

    fw = jnp.zeros((cp, ncp), jnp.bfloat16)
    fw = fw.at[:cout, :nc].set(fc_w.astype(jnp.bfloat16))

    fb = jnp.zeros((1, ncp), jnp.float32)
    fb = fb.at[:, :nc].set(fc_b.reshape(1, nc).astype(jnp.float32))

    return cw, fw, fb, nc


@functools.partial(jax.jit, static_argnames=("num_classes", "mode"))
def model_forward(x_nchw, cw, fw, fb, num_classes, mode=None):
    """Equivalent of Model.forward(x, mode=None): runs the backbone."""
    assert mode is None
    N, Cin, H, W = x_nchw.shape
    Hp, Wp = H + 2, W + 2
    K_aug, Cp = cw.shape
    NCp = fw.shape[1]

    # NCHW -> NHWC + 1-pixel halo pad; both live inside this jit so they fuse
    # into a single relayout fusion feeding the pallas_call.
    x_nhwc = jnp.transpose(x_nchw, (0, 2, 3, 1)).astype(jnp.float32)
    x_pad = jnp.pad(x_nhwc, ((0, 0), (1, 1), (1, 1), (0, 0)))

    flops = 2 * N * H * W * K_aug * Cp + 2 * N * Cp * NCp
    bytes_accessed = (x_pad.size * 4 + cw.size * 2 + fw.size * 2 +
                      fb.size * 4 + N * NCp * 4)

    # TODO(synk): for large H*W, add a spatial grid axis with a running GAP
    # accumulator (pl.when init/finalize) instead of one image per step.
    out = pl.pallas_call(
        backbone_kernel,
        grid=(N,),
        in_specs=[
            pl.BlockSpec((1, Hp, Wp, Cin), lambda n: (n, 0, 0, 0)),
            pl.BlockSpec((K_aug, Cp), lambda n: (0, 0)),
            pl.BlockSpec((Cp, NCp), lambda n: (0, 0)),
            pl.BlockSpec((1, NCp), lambda n: (0, 0)),
        ],
        out_specs=pl.BlockSpec((1, 1, NCp), lambda n: (n, 0, 0)),
        out_shape=jax.ShapeDtypeStruct((N, 1, NCp), jnp.float32),
        compiler_params=pltpu.CompilerParams(
            dimension_semantics=("parallel",)),
        cost_estimate=pl.CostEstimate(
            flops=flops, transcendentals=0, bytes_accessed=bytes_accessed),
    )(x_pad, cw, fw, fb)

    return out[:, 0, :num_classes]


def reference_forward(x_nchw, conv_w, conv_b, fc_w, fc_b):
    """Pure-JAX f32 reference with the module's math for correctness check."""
    x = jnp.transpose(x_nchw, (0, 2, 3, 1)).astype(jnp.float32)
    xp = jnp.pad(x, ((0, 0), (1, 1), (1, 1), (0, 0)))
    N, H, W, Cin = x.shape
    Cout = conv_w.shape[3]
    y = jnp.zeros((N, H, W, Cout), jnp.float32)
    for dy in range(KH):
        for dx in range(KW):
            y = y + jnp.einsum("nhwc,co->nhwo",
                               xp[:, dy:dy + H, dx:dx + W, :],
                               conv_w[dy, dx].astype(jnp.float32))
    y = jnp.maximum(y + conv_b.reshape(1, 1, 1, Cout).astype(jnp.float32), 0.0)
    feat = y.mean(axis=(1, 2))
    return feat @ fc_w.astype(jnp.float32) + fc_b.reshape(1, -1).astype(jnp.float32)


if __name__ == "__main__":
    key = jax.random.PRNGKey(0)
    k_x, k_cw, k_cb, k_fw, k_fb = jax.random.split(key, 5)

    # Small shapes consistent with an image-classification backbone.
    N, Cin, H, W = 2, 4, 16, 16
    Cout = 8
    num_classes = 8

    x = jax.random.normal(k_x, (N, Cin, H, W), dtype=jnp.float32)

    # Deterministic synthetic parameters (no checkpoint load).
    conv_w = 0.1 * jax.random.normal(k_cw, (KH, KW, Cin, Cout), dtype=jnp.float32)
    conv_b = 0.1 * jax.random.normal(k_cb, (Cout,), dtype=jnp.float32)
    fc_w = 0.1 * jax.random.normal(k_fw, (Cout, num_classes), dtype=jnp.float32)
    fc_b = 0.1 * jax.random.normal(k_fb, (num_classes,), dtype=jnp.float32)

    cw, fw, fb, nc = prepare_params(conv_w, conv_b, fc_w, fc_b)

    out = model_forward(x, cw, fw, fb, num_classes=nc)
    out = jax.block_until_ready(out)

    ref = reference_forward(x, conv_w, conv_b, fc_w, fc_b)
    # bf16 MXU operands vs. f32 reference -> bf16-level tolerance.
    np.testing.assert_allclose(np.asarray(out), np.asarray(ref),
                               rtol=2e-2, atol=2e-2)

    # TODO(synk): `_hook_before_iter` only toggles backbone training hooks; it
    # is not part of the forward compute and has no Pallas equivalent.
    print("KERNEL_OK")
</pallas_src>

<mosaic_0001>
module attributes {stable_mosaic.version = 11 : i64} {
  func.func @backbone_kernel(%arg0: i32, %arg1: memref<1x18x18x4xf32, #tpu.memory_space<vmem>>, %arg2: memref<37x128xbf16, #tpu.memory_space<vmem>>, %arg3: memref<128x128xbf16, #tpu.memory_space<vmem>>, %arg4: memref<1x128xf32, #tpu.memory_space<vmem>>, %arg5: memref<1x1x128xf32, #tpu.memory_space<vmem>>) attributes {dimension_semantics = [#tpu.dimension_semantics<parallel>], iteration_bounds = array<i64: 2>, scalar_prefetch = 0 : i64, scratch_operands = 0 : i64, tpu.core_type = #tpu.core_type<tc>, window_params = [{transform_indices = @transform_0, window_bounds = array<i64: 1, 18, 18, 4>}, {pipeline_mode = #tpu.pipeline_mode<synchronous>, transform_indices = @transform_1, window_bounds = array<i64: 37, 128>}, {pipeline_mode = #tpu.pipeline_mode<synchronous>, transform_indices = @transform_2, window_bounds = array<i64: 128, 128>}, {pipeline_mode = #tpu.pipeline_mode<synchronous>, transform_indices = @transform_3, window_bounds = array<i64: 1, 128>}, {transform_indices = @transform_4, window_bounds = array<i64: 1, 1, 128>}]} {
    %c0 = arith.constant 0 : index
    %c0_0 = arith.constant 0 : index
    %c0_1 = arith.constant 0 : index
    %c0_2 = arith.constant 0 : index
    %0 = vector.load %arg1[%c0, %c0_0, %c0_1, %c0_2] : memref<1x18x18x4xf32, #tpu.memory_space<vmem>>, vector<1x18x18x4xf32>
    %1 = vector.shape_cast %0 : vector<1x18x18x4xf32> to vector<18x18x4xf32>
    %2 = vector.extract_strided_slice %1 {offsets = [0, 0, 0], sizes = [16, 16, 4], strides = [1, 1, 1]} : vector<18x18x4xf32> to vector<16x16x4xf32>
    %3 = vector.shape_cast %2 : vector<16x16x4xf32> to vector<256x4xf32>
    %4 = vector.extract_strided_slice %1 {offsets = [0, 1, 0], sizes = [16, 16, 4], strides = [1, 1, 1]} : vector<18x18x4xf32> to vector<16x16x4xf32>
    %5 = vector.shape_cast %4 : vector<16x16x4xf32> to vector<256x4xf32>
    %6 = vector.extract_strided_slice %1 {offsets = [0, 2, 0], sizes = [16, 16, 4], strides = [1, 1, 1]} : vector<18x18x4xf32> to vector<16x16x4xf32>
    %7 = vector.shape_cast %6 : vector<16x16x4xf32> to vector<256x4xf32>
    %8 = vector.extract_strided_slice %1 {offsets = [1, 0, 0], sizes = [16, 16, 4], strides = [1, 1, 1]} : vector<18x18x4xf32> to vector<16x16x4xf32>
    %9 = vector.shape_cast %8 : vector<16x16x4xf32> to vector<256x4xf32>
    %10 = vector.extract_strided_slice %1 {offsets = [1, 1, 0], sizes = [16, 16, 4], strides = [1, 1, 1]} : vector<18x18x4xf32> to vector<16x16x4xf32>
    %11 = vector.shape_cast %10 : vector<16x16x4xf32> to vector<256x4xf32>
    %12 = vector.extract_strided_slice %1 {offsets = [1, 2, 0], sizes = [16, 16, 4], strides = [1, 1, 1]} : vector<18x18x4xf32> to vector<16x16x4xf32>
    %13 = vector.shape_cast %12 : vector<16x16x4xf32> to vector<256x4xf32>
    %14 = vector.extract_strided_slice %1 {offsets = [2, 0, 0], sizes = [16, 16, 4], strides = [1, 1, 1]} : vector<18x18x4xf32> to vector<16x16x4xf32>
    %15 = vector.shape_cast %14 : vector<16x16x4xf32> to vector<256x4xf32>
    %16 = vector.extract_strided_slice %1 {offsets = [2, 1, 0], sizes = [16, 16, 4], strides = [1, 1, 1]} : vector<18x18x4xf32> to vector<16x16x4xf32>
    %17 = vector.shape_cast %16 : vector<16x16x4xf32> to vector<256x4xf32>
    %18 = vector.extract_strided_slice %1 {offsets = [2, 2, 0], sizes = [16, 16, 4], strides = [1, 1, 1]} : vector<18x18x4xf32> to vector<16x16x4xf32>
    %19 = vector.shape_cast %18 : vector<16x16x4xf32> to vector<256x4xf32>
    %cst = arith.constant 1.000000e+00 : f32
    %20 = vector.broadcast %cst : f32 to vector<256x1xf32>
    %21 = tpu.concatenate %3, %5, %7, %9, %11, %13, %15, %17, %19, %20 in 1 : vector<256x4xf32>, vector<256x4xf32>, vector<256x4xf32>, vector<256x4xf32>, vector<256x4xf32>, vector<256x4xf32>, vector<256x4xf32>, vector<256x4xf32>, vector<256x4xf32>, vector<256x1xf32> -> vector<256x37xf32>
    %22 = arith.truncf %21 : vector<256x37xf32> to vector<256x37xbf16>
    %c0_3 = arith.constant 0 : index
    %c0_4 = arith.constant 0 : index
    %23 = vector.load %arg2[%c0_3, %c0_4] : memref<37x128xbf16, #tpu.memory_space<vmem>>, vector<37x128xbf16>
    %cst_5 = arith.constant dense<0.000000e+00> : vector<256x128xf32>
    %24 = tpu.matmul %22, %23, %cst_5 {dimension_numbers = #tpu.dot_dimension_numbers<[1], [0], [0], [1], [0, 0, 1, 1], [], []>} : vector<256x37xbf16>, vector<37x128xbf16>, vector<256x128xf32> -> vector<256x128xf32>
    %cst_6 = arith.constant 0.000000e+00 : f32
    %25 = vector.broadcast %cst_6 : f32 to vector<256x128xf32>
    %26 = arith.maximumf %24, %25 : vector<256x128xf32>
    %cst_7 = arith.constant dense<0.000000e+00> : vector<128xf32>
    %27 = vector.multi_reduction <add>, %26, %cst_7 [0] : vector<256x128xf32> to vector<128xf32>
    %28 = vector.shape_cast %27 : vector<128xf32> to vector<1x128xf32>
    %cst_8 = arith.constant 3.906250e-03 : f32
    %29 = vector.broadcast %cst_8 : f32 to vector<1x128xf32>
    %30 = arith.mulf %28, %29 : vector<1x128xf32>
    %31 = arith.truncf %30 : vector<1x128xf32> to vector<1x128xbf16>
    %c0_9 = arith.constant 0 : index
    %c0_10 = arith.constant 0 : index
    %32 = vector.load %arg3[%c0_9, %c0_10] : memref<128x128xbf16, #tpu.memory_space<vmem>>, vector<128x128xbf16>
    %cst_11 = arith.constant dense<0.000000e+00> : vector<1x128xf32>
    %33 = tpu.matmul %31, %32, %cst_11 {dimension_numbers = #tpu.dot_dimension_numbers<[1], [0], [0], [1], [0, 0, 1, 1], [], []>} : vector<1x128xbf16>, vector<128x128xbf16>, vector<1x128xf32> -> vector<1x128xf32>
    %c0_12 = arith.constant 0 : index
    %c0_13 = arith.constant 0 : index
    %34 = vector.load %arg4[%c0_12, %c0_13] : memref<1x128xf32, #tpu.memory_space<vmem>>, vector<1x128xf32>
    %35 = arith.addf %33, %34 : vector<1x128xf32>
    %c0_14 = arith.constant 0 : index
    %c0_15 = arith.constant 0 : index
    %c0_16 = arith.constant 0 : index
    %36 = vector.load %arg5[%c0_14, %c0_15, %c0_16] : memref<1x1x128xf32, #tpu.memory_space<vmem>>, vector<1x1x128xf32>
    %37 = vector.shape_cast %36 : vector<1x1x128xf32> to vector<1x128xf32>
    %38 = vector.shape_cast %35 : vector<1x128xf32> to vector<1x1x128xf32>
    tpu.vector_store %arg5[%c0_14, %c0_15, %c0_16], %38 {strides = array<i32>} : memref<1x1x128xf32, #tpu.memory_space<vmem>>, vector<1x1x128xf32>,
    return
  }
  func.func @transform_0(%arg0: i32) -> (i32, i32, i32, i32) {
    %c0_i32 = arith.constant 0 : i32
    %c0_i32_0 = arith.constant 0 : i32
    %c0_i32_1 = arith.constant 0 : i32
    %c0_i32_2 = arith.constant 0 : i32
    return %arg0, %c0_i32, %c0_i32_0, %c0_i32_1 : i32, i32, i32, i32
  }
  func.func @transform_1(%arg0: i32) -> (i32, i32) {
    %c0_i32 = arith.constant 0 : i32
    %c0_i32_0 = arith.constant 0 : i32
    %c0_i32_1 = arith.constant 0 : i32
    return %c0_i32, %c0_i32_0 : i32, i32
  }
  func.func @transform_2(%arg0: i32) -> (i32, i32) {
    %c0_i32 = arith.constant 0 : i32
    %c0_i32_0 = arith.constant 0 : i32
    %c0_i32_1 = arith.constant 0 : i32
    return %c0_i32, %c0_i32_0 : i32, i32
  }
  func.func @transform_3(%arg0: i32) -> (i32, i32) {
    %c0_i32 = arith.constant 0 : i32
    %c0_i32_0 = arith.constant 0 : i32
    %c0_i32_1 = arith.constant 0 : i32
    return %c0_i32, %c0_i32_0 : i32, i32
  }
  func.func @transform_4(%arg0: i32) -> (i32, i32, i32) {
    %c0_i32 = arith.constant 0 : i32
    %c0_i32_0 = arith.constant 0 : i32
    %c0_i32_1 = arith.constant 0 : i32
    return %arg0, %c0_i32, %c0_i32_0 : i32, i32, i32
  }
}

</mosaic_0001>

<bundles_post_ra>
// kernel: model_forward.1
= control target key start
LH: loop header
LB: loop body
LE: loop exit
PB: predicated region body
PF: predicated region fallthrough
CT: control target
= control target key end

     0   :  { %9 = vsyncpa [#allocation3], 0  ;;  %s4164_s0 = inlined_call_operand.vmem [shape: f32[2,18,18,4], index: 0, kind: input, shape index: {}]   ;;  %s4165_s1 = inlined_call_operand.vmem [shape: bf16[37,128], index: 1, kind: input, shape index: {}]   ;;  %s4166_s2 = inlined_call_operand.vmem [shape: bf16[128,128], index: 2, kind: input, shape index: {}]   ;;  %s4167_s3 = inlined_call_operand.vmem [shape: f32[1,128], index: 3, kind: input, shape index: {}]   ;;  %s4168_s4 = inlined_call_operand.hbm [shape: f32[2,1,128], index: 4, kind: output, shape index: {}]  }
   0x1   :  { %11 = vsyncpa [#allocation3 + $0x1], 0  ;;  %s2998_s15 = smov 0   ;;  %s3000_s16 = smov 0  }
   0x2   :  { %s3002_s17 = smov 0   ;;  %s3004_s18 = smov 0  }
   0x3 LB: > { %s3019_s19 = sadd.s32 4294967295, %s2959_s18   ;;  %s2049_s20 = sadd.s32 4294967294, %s2959_s18   ;;  %s2959_s18 = sphi %s3004_s18, %s4174_s18   ;;  %s2955_s17 = sphi %s3002_s17, %s4173_s17   ;;  %s2951_s16 = sphi %s3000_s16, %s4172_s16   ;;  %s2947_s15 = sphi %s2998_s15, %s4171_s15  }
   0x4   : > { %s3023_s21 = sadd.s32 1, %s2959_s18   ;;  %s113_s22 = sadd.s32 1, %s2955_s17 }
   0x5   : > { %s110_s23 = ssub.s32 %s2959_s18, %s3023_s21  ;;  %p123_p0 = scmp.ne.s32.totalorder %s2955_s17, %s2951_s16 }
   0x6   : > { %p111_p1 = scmp.eq.s32.totalorder %s110_s23, 0  ;;  %p124_p2 = scmp.eq.s32.totalorder %s3019_s19, 1 }
   0x7   : > { %p129_p3 = scmp.ne.s32.totalorder %s2951_s16, %s2947_s15  ;;  %p130_p4 = scmp.eq.s32.totalorder %s2049_s20, 1 }
   0x8   : > { %s3034_s24 = scalar_select %p111_p1, %s2955_s17, %s113_s22  }
   0x9   : > { %p3036_p5 = por %p124_p2, %p123_p0  ;;  %p3040_p6 = por %p130_p4, %p129_p3 }
   0xa   : > { %p2052_p7 = scmp.ge.s32.totalorder %s2959_s18, 1  ;;  %p165_p8 = scmp.lt.s32.totalorder %s2959_s18, 3 }
   0xc   : > { %p166_p9 = pnand %p2052_p7, %p165_p8 }
   0xd   : > { %p190_p10 = scmp.lt.s32.totalorder (!%p166_p9), %s3019_s19, 1  ;;  %vm379_vm0 = vcmask (!%p166_p9), 1045504   ;;  %vm298_vm1 = vcmask (!%p166_p9), 1046528   ;;  %s2961_s6 = smov (!%p166_p9), 12   ;;  %v2861_v51 = vld [vmem:[%s4165_s1] sm:$0xff] (!%p166_p9)   ;;  %v2862_v55 = vld [vmem:[%s4165_s1 + $0x8] sm:$0xff] (!%p166_p9)  }
   0xe   : > { %169 = sbr.rel (%p166_p9) target bundleno = 872 (0x368), region = 36  ;;  %s2962_s7 = smov (!%p166_p9), 8   ;;  %2112 = vmatprep.subr.bf16.mxu0 (!%p166_p9), %v2861_v51  ;;  %vm1636_vm2 = vcmask (!%p166_p9), 1041408   ;;  %vm1637_vm3 = vcmask (!%p166_p9), 1042432   ;;  %vm1254_vm4 = vcmask (!%p166_p9), 31744   ;;  %vm1287_vm5 = vcmask (!%p166_p9), 64512  }
   0xf   : > { %s2963_s8 = smov (!%p166_p9), 4   ;;  %s2964_s9 = smov (!%p166_p9), 16   ;;  %2113 = vmatpush3.bf16.msra.mxu0 (!%p166_p9), %v2861_v51  ;;  %vm1320_vm6 = vcmask (!%p166_p9), 97280   ;;  %vm1353_vm7 = vcmask (!%p166_p9), 130048   ;;  %vm1386_vm8 = vcmask (!%p166_p9), 162816   ;;  %vm1419_vm9 = vcmask (!%p166_p9), 195584  }
  0x10   : > { %s2965_s12 = smov (!%p166_p9), 20   ;;  %2114 = vmatprep.subr.bf16.mxu0 (!%p166_p9), %v2862_v55  ;;  %s2966_s20 = smov (!%p166_p9), 24   ;;  %vm1452_vm10 = vcmask (!%p166_p9), 228352   ;;  %vm1485_vm11 = vcmask (!%p166_p9), 261120   ;;  %vm1518_vm12 = vcmask (!%p166_p9), 293888   ;;  %vm1587_vm13 = vcmask (!%p166_p9), 302080  }
  0x11   : > { %s2967_s22 = smov (!%p166_p9), 28   ;;  %s2968_s23 = smov (!%p166_p9), 32   ;;  %vm2971_vm14 = vmmov (!%p166_p9), 0  }
  0x13   : > { %2115 = vmatpush3.bf16.msra.mxu0 (!%p166_p9), %v2862_v55 }
  0x15   : > { %s191_s27 = scalar_select %p190_p10, %s3019_s19, 1 }
  0x17   : > { %s2170_s28 = smul.u32 432, %s191_s27 }
  0x19   : > { %s3051_s5 = scalar_lea.vmem %s4164_s0, %s2170_s28  ;;  %s188_s28 = sand.u32 1, %s2951_s16  }
  0x1a   : > { %v202_v0 = vld [vmem:[%s3051_s5 + $0x30] sm:$0xff]  ;;  %v3055_v1 = vld [vmem:[%s3051_s5 + $0x38] sm:$0xff]  ;;  %v3064_v4 = vld [vmem:[%s3051_s5 + $0x20] sm:$0xff]  ;;  %s1982_s11 = scalar_lea.sflag [#allocation3], %s188_s28 }
  0x1b   : > { %v3058_v2 = vld [vmem:[%s3051_s5 + $0x18] sm:$0xff]  ;;  %v3061_v3 = vpack.i.bf16 %v3055_v1, %v202_v0  ;;  %v3067_v5 = vld [vmem:[%s3051_s5] sm:$0xff]  ;;  %v3070_v6 = vld [vmem:[%s3051_s5 + $0x8] sm:$0xff]  ;;  %v309_v9 = vrot.slane %v202_v0, 1  ;;  %v386_v19 = vrot.slane %v3064_v4, 2  ;;  %v305_v22 = vrot.slane %v3064_v4, 1 }
  0x1c   : > { %v385_v7 = vrot.slane %v3058_v2, 2  ;;  %v304_v8 = vrot.slane %v3058_v2, 1  ;;  %v2221_v10 = vpack.i.bf16 %v3064_v4, %v3058_v2  ;;  %v198_v11 = vld [vmem:[%s3051_s5 + $0x10] sm:$0x3]  ;;  %v380_v12 = vrot.slane %v3067_v5, 2  ;;  %v3107_v46 = vld [vmem:[%s3051_s5 + $0x48] sm:$0xff] }
  0x1d   : > { %v381_v13 = vrot.slane %v3070_v6, 2  ;;  %v299_v14 = vrot.slane %v3067_v5, 1  ;;  %2227 = vrot.lane.b32.xlu1 %v3061_v3, %s2961_s6  ;;  %v383_v15 = vrot.slane %v198_v11, 2  ;;  %v300_v16 = vrot.slane %v3070_v6, 1  ;;  %v201_v18 = vld [vmem:[%s3051_s5 + $0x28] sm:$0x3] }
  0x1e   : > { %v302_v17 = vrot.slane %v198_v11, 1  ;;  %2222 = vrot.lane.b32.xlu0 %v2221_v10, %s2961_s6  ;;  %v388_v21 = vrot.slane %v201_v18, 2  ;;  %v307_v23 = vrot.slane %v201_v18, 1  ;;  %v204_v24 = vld [vmem:[%s3051_s5 + $0x40] sm:$0x3]  ;;  %v387_v28 = vsel %vm379_vm0, %v385_v7, %v386_v19  ;;  %v3110_v47 = vld [vmem:[%s3051_s5 + $0x50] sm:$0xff] }
  0x1f   : > { %v382_v20 = vsel %vm379_vm0, %v380_v12, %v381_v13  ;;  %v384_v25 = vsel %vm379_vm0, %v381_v13, %v383_v15  ;;  %v301_v26 = vsel %vm298_vm1, %v299_v14, %v300_v16  ;;  %v306_v32 = vsel %vm298_vm1, %v304_v8, %v305_v22  ;;  %v207_v48 = vld [vmem:[%s3051_s5 + $0x58] sm:$0x3]  ;;  %v209_v7 = vld [vmem:[%s3051_s5 + $0x68] sm:$0xff]  ;;  %v210_v8 = vld [vmem:[%s3051_s5 + $0x70] sm:$0x3] }
  0x20   : > { %v303_v27 = vsel %vm298_vm1, %v300_v16, %v302_v17  ;;  %v2241_v29 = vpack.i.bf16 %v384_v25, %v382_v20  ;;  %v389_v31 = vsel %vm379_vm0, %v386_v19, %v388_v21  ;;  %v308_v33 = vsel %vm298_vm1, %v305_v22, %v307_v23  ;;  %v211_v21 = vld [vmem:[%s3051_s5 + $0x78] sm:$0xff]  ;;  %v212_v22 = vld [vmem:[%s3051_s5 + $0x80] sm:$0xff]  ;;  %v213_v23 = vld [vmem:[%s3051_s5 + $0x88] sm:$0x3] }
  0x21   : > { %v2231_v30 = vpack.i.bf16 %v303_v27, %v301_v26  ;;  %v310_v34 = vrot.slane %v3055_v1, 1  ;;  %v312_v35 = vrot.slane %v204_v24, 1  ;;  %v2246_v36 = vpack.i.bf16 %v389_v31, %v387_v28  ;;  %v2863_v25 = vld [vmem:[%s4165_s1 + $0x10] ss:$0 sps:$4 sm:$0x77]  }
  0x22   : > { %2242 = vrot.lane.b32.xlu1 %v2241_v29, %s2962_s7  ;;  %v2236_v37 = vpack.i.bf16 %v308_v33, %v306_v32  ;;  %v390_v38 = vrot.slane %v202_v0, 2  ;;  %v391_v41 = vrot.slane %v3055_v1, 2  ;;  %v393_v42 = vrot.slane %v204_v24, 2 }
  0x23   : > { %2232 = vrot.lane.b32.xlu0 %v2231_v30, %s2963_s8  ;;  %v311_v39 = vsel %vm298_vm1, %v309_v9, %v310_v34  ;;  %v313_v40 = vsel %vm298_vm1, %v310_v34, %v312_v35  ;;  %v314_v50 = vrot.slane %v3107_v46, 1  ;;  %v315_v52 = vrot.slane %v3110_v47, 1 }
  0x24   : > { %v2256_v43 = vpack.i.bf16 %v313_v40, %v311_v39  ;;  %v392_v44 = vsel %vm379_vm0, %v390_v38, %v391_v41  ;;  %v394_v45 = vsel %vm379_vm0, %v391_v41, %v393_v42  ;;  %v317_v53 = vrot.slane %v207_v48, 1 }
  0x25   : > { %v2266_v49 = vpack.i.bf16 %v394_v45, %v392_v44  ;;  %v2276_v54 = vpack.i.bf16 %v3110_v47, %v3107_v46  ;;  %v316_v56 = vsel %vm298_vm1, %v314_v50, %v315_v52  ;;  %v395_v59 = vrot.slane %v3107_v46, 2  ;;  %v215_v44 = vld [vmem:[%s3051_s5 + $0x98] sm:$0xff]  ;;  %v216_v45 = vld [vmem:[%s3051_s5 + $0xa0] sm:$0x3] }
  0x26   : > { %2247 = vrot.lane.b32.xlu1 %v2246_v36, %s2962_s7  ;;  %v318_v57 = vsel %vm298_vm1, %v315_v52, %v317_v53  ;;  %v396_v60 = vrot.slane %v3110_v47, 2  ;;  %v398_v61 = vrot.slane %v207_v48, 2  ;;  %v320_v10 = vrot.slane %v209_v7, 1 }
  0x27   : > { %2237 = vrot.lane.b32.xlu0 %v2236_v37, %s2963_s8  ;;  %v2286_v58 = vpack.i.bf16 %v318_v57, %v316_v56  ;;  %v322_v11 = vrot.slane %v210_v8, 1  ;;  %v401_v16 = vrot.slane %v209_v7, 2  ;;  %v403_v17 = vrot.slane %v210_v8, 2 }
  0x28   : > { %v397_v62 = vsel %vm379_vm0, %v395_v59, %v396_v60  ;;  %v399_v63 = vsel %vm379_vm0, %v396_v60, %v398_v61  ;;  %v324_v26 = vrot.slane %v211_v21, 1  ;;  %v325_v27 = vrot.slane %v212_v22, 1  ;;  %v217_v60 = vld [vmem:[%s3051_s5 + $0xa8] sm:$0xff]  ;;  %v218_v61 = vld [vmem:[%s3051_s5 + $0xb0] sm:$0xff] }
  0x29   : > { %v2301_v0 = vpack.i.bf16 %v399_v63, %v397_v62  ;;  %v323_v15 = vsel %vm298_vm1, %v320_v10, %v322_v11  ;;  %v404_v20 = vsel %vm379_vm0, %v401_v16, %v403_v17  ;;  %v327_v28 = vrot.slane %v213_v23, 1  ;;  %v219_v62 = vld [vmem:[%s3051_s5 + $0xb8] sm:$0x3] }
  0x2a   : > { %2257 = vrot.lane.b32.xlu1 %v2256_v43, %s2964_s9  ;;  %v2969_v29 = vmov 65535   ;;  %v2356_v32 = vpack.i.bf16 %v212_v22, %v211_v21  ;;  %v326_v34 = vsel %vm298_vm1, %v324_v26, %v325_v27  ;;  %v406_v38 = vrot.slane %v212_v22, 2 }
  0x2b   : > { %2252 = vrot.lane.b32.xlu0 %v2236_v37, %s2964_s9  ;;  %v1638_v30 = vsel %vm1636_vm2, 4294967295, %v2969_v29  ;;  %v328_v35 = vsel %vm298_vm1, %v325_v27, %v327_v28  ;;  %v405_v37 = vrot.slane %v211_v21, 2  ;;  %v408_v39 = vrot.slane %v213_v23, 2 }
  0x2c   : > { %v1639_v31 = vsel %vm1637_vm3, %v1638_v30, 0  ;;  %v332_v50 = vrot.slane %v216_v45, 1  ;;  %v411_v55 = vrot.slane %v215_v44, 2  ;;  %v413_v56 = vrot.slane %v216_v45, 2 }
  0x2d   : > { %v1641_v33 = vand.u32 %v2863_v25, %v1639_v31  ;;  %v407_v40 = vsel %vm379_vm0, %v405_v37, %v406_v38  ;;  %v409_v41 = vsel %vm379_vm0, %v406_v38, %v408_v39  ;;  %v2436_v8 = vpack.i.bf16 %v218_v61, %v217_v60 }
  0x2e   : > { %2267 = vrot.lane.b32.xlu1 %v2266_v49, %s2965_s12  ;;  %v2381_v42 = vpack.i.bf16 %v409_v41, %v407_v40  ;;  %v414_v59 = vsel %vm379_vm0, %v411_v55, %v413_v56 }
  0x2f   : > { %2262 = vrot.lane.b32.xlu0 %v2246_v36, %s2965_s12  ;;  %2116 = vmatprep.subr.bf16.mxu0 %v1641_v33  ;;  %v2366_v36 = vpack.i.bf16 %v328_v35, %v326_v34  ;;  %v224_v34 = vld [vmem:[%s3051_s5 + $0xe0] sm:$0xff]  ;;  %v225_v35 = vld [vmem:[%s3051_s5 + $0xe8] sm:$0x3] }
  0x30   : > { %2117 = vmatpush3.bf16.msra.mxu0 %v1641_v33  ;;  %v223_v33 = vld [vmem:[%s3051_s5 + $0xd8] sm:$0xff]  ;;  %v345_v38 = vrot.slane %v224_v34, 1  ;;  %v347_v39 = vrot.slane %v225_v35, 1 }
  0x31   : > { %v344_v37 = vrot.slane %v223_v33, 1  ;;  %v3226_v40 = vpack.i.bf16 %v224_v34, %v223_v33 }
  0x32   : > { %2277 = vrot.lane.b32.xlu1 %v2276_v54, %s2966_s20 }
  0x33   : > { %2272 = vrot.lane.b32.xlu0 %v3061_v3, %s2966_s20  ;;  %v208_v3 = vld [vmem:[%s3051_s5 + $0x60] sm:$0xff] }
  0x34   : > { %v319_v9 = vrot.slane %v208_v3, 1  ;;  %v2326_v12 = vpack.i.bf16 %v209_v7, %v208_v3  ;;  %v400_v13 = vrot.slane %v208_v3, 2  ;;  %v335_v3 = vrot.slane %v218_v61, 1 }
  0x35   : > { %v337_v7 = vrot.slane %v219_v62, 1 }
  0x36   : > { %2287 = vrot.lane.b32.xlu1 %v2286_v58, %s2967_s22  ;;  %v321_v14 = vsel %vm298_vm1, %v319_v9, %v320_v10  ;;  %v402_v19 = vsel %vm379_vm0, %v400_v13, %v401_v16  ;;  %v416_v13 = vrot.slane %v218_v61, 2  ;;  %v3257_v61 = vld [vmem:[%s3051_s5 + $0x108] sm:$0xff] }
  0x37   : > { %2282 = vrot.lane.b32.xlu0 %v2256_v43, %s2967_s22  ;;  %v2336_v18 = vpack.i.bf16 %v323_v15, %v321_v14  ;;  %v2346_v24 = vpack.i.bf16 %v404_v20, %v402_v19  ;;  %v338_v10 = vsel %vm298_vm1, %v335_v3, %v337_v7  ;;  %v418_v14 = vrot.slane %v219_v62, 2  ;;  %v221_v19 = vld [vmem:[%s3051_s5 + $0xc8] sm:$0xff]  ;;  %v222_v20 = vld [vmem:[%s3051_s5 + $0xd0] sm:$0x3] }
  0x38   : > { %v340_v22 = vrot.slane %v221_v19, 1  ;;  %v342_v23 = vrot.slane %v222_v20, 1  ;;  %v421_v28 = vrot.slane %v221_v19, 2  ;;  %v423_v29 = vrot.slane %v222_v20, 2  ;;  %v3260_v62 = vld [vmem:[%s3051_s5 + $0x110] sm:$0xff] }
  0x39   : > { %v419_v16 = vsel %vm379_vm0, %v416_v13, %v418_v14  ;;  %v354_v14 = vrot.slane %v3257_v61, 1 }
  0x3a   : > { %2297 = vrot.lane.b32.xlu1 %v2256_v43, %s2963_s8  ;;  %v214_v43 = vld [vmem:[%s3051_s5 + $0x90] sm:$0xff]  ;;  %v343_v27 = vsel %vm298_vm1, %v340_v22, %v342_v23 }
  0x3b   : > { %2292 = vrot.lane.b32.xlu0 %v2266_v49, %s2968_s23  ;;  %v329_v48 = vrot.slane %v214_v43, 1  ;;  %v2406_v51 = vpack.i.bf16 %v215_v44, %v214_v43  ;;  %v410_v52 = vrot.slane %v214_v43, 2  ;;  %v348_v43 = vsel %vm298_vm1, %v345_v38, %v347_v39 }
  0x3e   : > { %2307 = vrot.lane.b32.xlu1 %v2286_v58, %s2963_s8 }
  0x3f   : > { %2302 = vrot.lane.b32.xlu0 %v2301_v0, %s2968_s23 }
  0x42   : > { %2317 = vrot.lane.b32.xlu1 %v2301_v0, %s2962_s7 }
  0x43   : > { %2312 = vrot.lane.b32.xlu0 %v2266_v49, %s2962_s7  ;;  %v330_v49 = vrot.slane %v215_v44, 1 }
  0x45   : > { %v331_v53 = vsel %vm298_vm1, %v329_v48, %v330_v49  ;;  %v425_v48 = vrot.slane %v223_v33, 2 }
  0x46   : > { %2327 = vrot.lane.b32.xlu1 %v2326_v12, %s2961_s6 }
  0x47   : > { %2322 = vrot.lane.b32.xlu0 %v2276_v54, %s2961_s6  ;;  %v333_v54 = vsel %vm298_vm1, %v330_v49, %v332_v50  ;;  %v426_v49 = vrot.slane %v224_v34, 2  ;;  %v428_v50 = vrot.slane %v225_v35, 2 }
  0x48   : > { %v2416_v57 = vpack.i.bf16 %v333_v54, %v331_v53 }
  0x49   : > { %v427_v53 = vsel %vm379_vm0, %v425_v48, %v426_v49  ;;  %v429_v54 = vsel %vm379_vm0, %v426_v49, %v428_v50 }
  0x4a   : > { %2337 = vrot.lane.b32.xlu1 %v2336_v18, %s2964_s9 }
  0x4b   : > { %2332 = vrot.lane.b32.xlu0 %v2286_v58, %s2964_s9  ;;  %v412_v58 = vsel %vm379_vm0, %v410_v52, %v411_v55 }
  0x4c   : > { %v2426_v63 = vpack.i.bf16 %v414_v59, %v412_v58  ;;  %v227_v58 = vld [vmem:[%s3051_s5 + $0xf8] sm:$0xff]  ;;  %v228_v59 = vld [vmem:[%s3051_s5 + $0x100] sm:$0x3] }
  0x4e   : > { %2347 = vrot.lane.b32.xlu1 %v2346_v24, %s2965_s12 }
  0x4f   : > { %2342 = vrot.lane.b32.xlu0 %v2301_v0, %s2965_s12  ;;  %v334_v0 = vrot.slane %v217_v60, 1 }
  0x51   : > { %v336_v9 = vsel %vm298_vm1, %v334_v0, %v335_v3  ;;  %v350_v0 = vrot.slane %v227_v58, 1  ;;  %v3263_v3 = vld [vmem:[%s3051_s5 + $0x118] sm:$0x3] }
  0x52   : > { %2357 = vrot.lane.b32.xlu1 %v2356_v32, %s2966_s20  ;;  %v2446_v11 = vpack.i.bf16 %v338_v10, %v336_v9  ;;  %v352_v9 = vrot.slane %v228_v59, 1 }
  0x53   : > { %2352 = vrot.lane.b32.xlu0 %v2326_v12, %s2966_s20  ;;  %v415_v12 = vrot.slane %v217_v60, 2  ;;  %v3254_v60 = vpack.i.bf16 %v429_v54, %v427_v53 }
  0x55   : > { %v417_v15 = vsel %vm379_vm0, %v415_v12, %v416_v13  ;;  %v433_v13 = vrot.slane %v228_v59, 2 }
  0x56   : > { %2367 = vrot.lane.b32.xlu1 %v2366_v36, %s2967_s22  ;;  %v2461_v17 = vpack.i.bf16 %v419_v16, %v417_v15  ;;  %v355_v15 = vrot.slane %v3260_v62, 1 }
  0x57   : > { %2362 = vrot.lane.b32.xlu0 %v2336_v18, %s2967_s22 }
  0x5a   : > { %2377 = vrot.lane.b32.xlu1 %v2336_v18, %s2963_s8  ;;  %v220_v18 = vld [vmem:[%s3051_s5 + $0xc0] sm:$0xff] }
  0x5b   : > { %2372 = vrot.lane.b32.xlu0 %v2346_v24, %s2968_s23  ;;  %v339_v21 = vrot.slane %v220_v18, 1  ;;  %v420_v25 = vrot.slane %v220_v18, 2 }
  0x5d   : > { %v341_v26 = vsel %vm298_vm1, %v339_v21, %v340_v22  ;;  %v422_v31 = vsel %vm379_vm0, %v420_v25, %v421_v28 }
  0x5e   : > { %2387 = vrot.lane.b32.xlu1 %v2366_v36, %s2963_s8  ;;  %v2496_v30 = vpack.i.bf16 %v343_v27, %v341_v26 }
  0x5f   : > { %2382 = vrot.lane.b32.xlu0 %v2381_v42, %s2968_s23 }
  0x62   : > { %2397 = vrot.lane.b32.xlu1 %v2381_v42, %s2962_s7 }
  0x63   : > { %2392 = vrot.lane.b32.xlu0 %v2346_v24, %s2962_s7  ;;  %v2486_v24 = vpack.i.bf16 %v221_v19, %v220_v18  ;;  %v357_v18 = vrot.slane %v3263_v3, 1 }
  0x66   : > { %2407 = vrot.lane.b32.xlu1 %v2406_v51, %s2961_s6 }
  0x67   : > { %2402 = vrot.lane.b32.xlu0 %v2356_v32, %s2961_s6  ;;  %v424_v32 = vsel %vm379_vm0, %v421_v28, %v423_v29  ;;  %v356_v29 = vsel %vm298_vm1, %v354_v14, %v355_v15 }
  0x6a   : > { %2417 = vrot.lane.b32.xlu1 %v2416_v57, %s2964_s9 }
  0x6b   : > { %2412 = vrot.lane.b32.xlu0 %v2366_v36, %s2964_s9  ;;  %v3221_v36 = vpack.i.bf16 %v424_v32, %v422_v31  ;;  %v358_v32 = vsel %vm298_vm1, %v355_v15, %v357_v18 }
  0x6c   : > { %v3316_v48 = vpack.i.bf16 %v358_v32, %v356_v29 }
  0x6e   : > { %2427 = vrot.lane.b32.xlu1 %v2426_v63, %s2965_s12 }
  0x6f   : > { %2422 = vrot.lane.b32.xlu0 %v2381_v42, %s2965_s12  ;;  %v346_v42 = vsel %vm298_vm1, %v344_v37, %v345_v38 }
  0x70   : > { %v3237_v45 = vpack.i.bf16 %v348_v43, %v346_v42 }
  0x72   : > { %2437 = vrot.lane.b32.xlu1 %v2436_v8, %s2966_s20 }
  0x73   : > { %2432 = vrot.lane.b32.xlu0 %v2406_v51, %s2966_s20 }
  0x76   : > { %2447 = vrot.lane.b32.xlu1 %v2446_v11, %s2967_s22 }
  0x77   : > { %2442 = vrot.lane.b32.xlu0 %v2416_v57, %s2967_s22 }
  0x7a   : > { %2457 = vrot.lane.b32.xlu1 %v2416_v57, %s2963_s8  ;;  %v226_v57 = vld [vmem:[%s3051_s5 + $0xf0] sm:$0xff] }
  0x7b   : > { %2452 = vrot.lane.b32.xlu0 %v2426_v63, %s2968_s23  ;;  %v430_v10 = vrot.slane %v226_v57, 2  ;;  %v3269_v12 = vpack.i.bf16 %v227_v58, %v226_v57 }
  0x7e   : > { %2467 = vrot.lane.b32.xlu1 %v2446_v11, %s2963_s8 }
  0x7f   : > { %2462 = vrot.lane.b32.xlu0 %v2461_v17, %s2968_s23 }
  0x82   : > { %2477 = vrot.lane.b32.xlu1 %v2461_v17, %s2962_s7 }
  0x83   : > { %2472 = vrot.lane.b32.xlu0 %v2426_v63, %s2962_s7  ;;  %v349_v63 = vrot.slane %v226_v57, 1 }
  0x85   : > { %v351_v19 = vsel %vm298_vm1, %v349_v63, %v350_v0 }
  0x86   : > { %2487 = vrot.lane.b32.xlu1 %v2486_v24, %s2961_s6 }
  0x87   : > { %2482 = vrot.lane.b32.xlu0 %v2436_v8, %s2961_s6 }
  0x8a   : > { %2497 = vrot.lane.b32.xlu1 %v2496_v30, %s2964_s9 }
  0x8b   : > { %2492 = vrot.lane.b32.xlu0 %v2446_v11, %s2964_s9  ;;  %v431_v11 = vrot.slane %v227_v58, 2 }
  0x8d   : > { %v432_v25 = vsel %vm379_vm0, %v430_v10, %v431_v11  ;;  %v434_v28 = vsel %vm379_vm0, %v431_v11, %v433_v13 }
  0x8e   : > { %2507 = vrot.lane.b32.xlu1 %v3221_v36, %s2965_s12  ;;  %v3312_v39 = vpack.i.bf16 %v434_v28, %v432_v25 }
  0x8f   : > { %2502 = vrot.lane.b32.xlu0 %v2461_v17, %s2965_s12  ;;  %v3228_v41 = vpop.permute.xlu1 %2227 }
  0x90   : > { %v3232_v44 = vpop.permute.xlu0 %2222  ;;  %v2229_v49 = vunpack.i.l.bf16 %v3228_v41 }
  0x91   : > { %v2224_v50 = vunpack.i.l.bf16 %v3232_v44 }
  0x92   : > { %2517 = vrot.lane.b32.xlu1 %v3226_v40, %s2966_s20 }
  0x93   : > { %2512 = vrot.lane.b32.xlu0 %v2486_v24, %s2966_s20  ;;  %v353_v24 = vsel %vm298_vm1, %v350_v0, %v352_v9 }
  0x94   : > { %v3239_v51 = vpop.permute.xlu1 %2242  ;;  %v3310_v38 = vpack.i.bf16 %v353_v24, %v351_v19 }
  0x95   : > { %v2233_v52 = vpop.permute.xlu0 %2232  ;;  %v2245_v26 = vunpack.i.h.bf16 %v3239_v51  ;;  %v2244_v27 = vunpack.i.l.bf16 %v3239_v51 }
  0x96   : > { %2527 = vrot.lane.b32.xlu1 %v3237_v45, %s2967_s22  ;;  %v2235_v16 = vunpack.i.h.bf16 %v2233_v52  ;;  %v2234_v17 = vunpack.i.l.bf16 %v2233_v52 }
  0x97   : > { %2522 = vrot.lane.b32.xlu0 %v2496_v30, %s2967_s22 }
  0x98   : > { %v3246_v55 = vpop.permute.xlu1 %2247  ;;  %v1255_v31 = vsel %vm1254_vm4, %v3067_v5, %v2234_v17 }
  0x99   : > { %v2238_v56 = vpop.permute.xlu0 %2237  ;;  %v2250_v33 = vunpack.i.h.bf16 %v3246_v55  ;;  %v2249_v34 = vunpack.i.l.bf16 %v3246_v55  ;;  %v1288_v43 = vsel %vm1287_vm5, %v1255_v31, %v2244_v27 }
  0x9a   : > { %2537 = vrot.lane.b32.xlu1 %v2496_v30, %s2963_s8  ;;  %v2240_v20 = vunpack.i.h.bf16 %v2238_v56  ;;  %v2239_v21 = vunpack.i.l.bf16 %v2238_v56  ;;  %v1256_v30 = vsel %vm1254_vm4, %v3070_v6, %v2235_v16  ;;  %v3302_v6 = vpack.i.bf16 %v3260_v62, %v3257_v61 }
  0x9b   : > { %2532 = vrot.lane.b32.xlu0 %v3221_v36, %s2968_s23  ;;  %v1289_v42 = vsel %vm1287_vm5, %v1256_v30, %v2245_v26 }
  0x9c   : > { %v3265_v7 = vpop.permute.xlu1 %2257  ;;  %v1258_v5 = vsel %vm1254_vm4, %v3064_v4, %v2240_v20  ;;  %v1257_v35 = vsel %vm1254_vm4, %v3058_v2, %v2239_v21  ;;  %v2230_v4 = vunpack.i.h.bf16 %v3228_v41  ;;  %v2225_v2 = vunpack.i.h.bf16 %v3232_v44 }
  0x9d   : > { %v3267_v8 = vpop.permute.xlu0 %2252  ;;  %v1291_v51 = vsel %vm1287_vm5, %v1258_v5, %v2250_v33  ;;  %v1290_v52 = vsel %vm1287_vm5, %v1257_v35, %v2249_v34  ;;  %v1321_v41 = vsel %vm1320_vm6, %v1288_v43, %v2224_v50  ;;  %v2259_v59 = vunpack.i.l.bf16 %v3265_v7 }
  0x9e   : > { %2547 = vrot.lane.b32.xlu1 %v3237_v45, %s2963_s8  ;;  %v2255_v53 = vunpack.i.h.bf16 %v3267_v8  ;;  %v2254_v54 = vunpack.i.l.bf16 %v3267_v8  ;;  %v1322_v55 = vsel %vm1320_vm6, %v1289_v42, %v2225_v2  ;;  %v1323_v9 = vsel %vm1320_vm6, %v1290_v52, %v2229_v49 }
  0x9f   : > { %2542 = vrot.lane.b32.xlu0 %v3254_v60, %s2968_s23  ;;  %v1324_v8 = vsel %vm1320_vm6, %v1291_v51, %v2230_v4  ;;  %v1356_v29 = vsel %vm1353_vm7, %v1323_v9, %v2259_v59  ;;  %v435_v51 = vrot.slane %v3257_v61, 2  ;;  %v232_v61 = vld [vmem:[%s3051_s5 + $0x120] sm:$0xff] }
  0xa0   : > { %v3279_v22 = vpop.permute.xlu1 %2267  ;;  %v1354_v13 = vsel %vm1353_vm7, %v1321_v41, %v2254_v54  ;;  %v1355_v14 = vsel %vm1353_vm7, %v1322_v55, %v2255_v53  ;;  %v436_v54 = vrot.slane %v3260_v62, 2  ;;  %v438_v41 = vrot.slane %v3263_v3, 2 }
  0xa1   : > { %v3281_v23 = vpop.permute.xlu0 %2262  ;;  %v2269_v15 = vunpack.i.l.bf16 %v3279_v22 }
  0xa2   : > { %2557 = vrot.lane.b32.xlu1 %v3254_v60, %s2962_s7  ;;  %v2265_v44 = vunpack.i.h.bf16 %v3281_v23  ;;  %v2264_v56 = vunpack.i.l.bf16 %v3281_v23  ;;  %v437_v3 = vsel %vm379_vm0, %v435_v51, %v436_v54 }
  0xa3   : > { %2552 = vrot.lane.b32.xlu0 %v3221_v36, %s2962_s7  ;;  %v1389_v33 = vsel %vm1386_vm8, %v1356_v29, %v2269_v15 }
  0xa4   : > { %v3308_v37 = vpop.permute.xlu1 %2277  ;;  %v1387_v16 = vsel %vm1386_vm8, %v1354_v13, %v2264_v56  ;;  %v1388_v17 = vsel %vm1386_vm8, %v1355_v14, %v2265_v44  ;;  %v3414_v13 = vld [vmem:[%s3051_s5 + $0x140] sm:$0xff]  ;;  %v3417_v14 = vld [vmem:[%s3051_s5 + $0x148] sm:$0x3] }
  0xa5   : > { %v2273_v36 = vpop.permute.xlu0 %2272  ;;  %v2280_v18 = vunpack.i.h.bf16 %v3308_v37  ;;  %v2279_v19 = vunpack.i.l.bf16 %v3308_v37 }
  0xa6   : > { %2567 = vrot.lane.b32.xlu1 %v3269_v12, %s2961_s6  ;;  %v2275_v63 = vunpack.i.h.bf16 %v2273_v36  ;;  %v2274_v0 = vunpack.i.l.bf16 %v2273_v36 }
  0xa7   : > { %2562 = vrot.lane.b32.xlu0 %v3226_v40, %s2961_s6  ;;  %v2260_v40 = vunpack.i.h.bf16 %v3265_v7  ;;  %v2270_v7 = vunpack.i.h.bf16 %v3279_v22  ;;  %v1422_v36 = vsel %vm1419_vm9, %v1389_v33, %v2279_v19 }
  0xa8   : > { %v2288_v57 = vpop.permute.xlu1 %2287  ;;  %v1420_v24 = vsel %vm1419_vm9, %v1387_v16, %v2274_v0  ;;  %v1421_v25 = vsel %vm1419_vm9, %v1388_v17, %v2275_v63  ;;  %v359_v0 = vrot.slane %v232_v61, 1 }
  0xa9   : > { %v2283_v58 = vpop.permute.xlu0 %2282  ;;  %v2290_v26 = vunpack.i.h.bf16 %v2288_v57  ;;  %v2289_v27 = vunpack.i.l.bf16 %v2288_v57  ;;  %v1357_v30 = vsel %vm1353_vm7, %v1324_v8, %v2260_v40  ;;  %v233_v57 = vld [vmem:[%s3051_s5 + $0x128] sm:$0xff]  ;;  %v439_v40 = vsel %vm379_vm0, %v436_v54, %v438_v41 }
  0xaa   : > { %v2285_v10 = vunpack.i.h.bf16 %v2283_v58  ;;  %v2284_v11 = vunpack.i.l.bf16 %v2283_v58  ;;  %2577 = vrot.lane.b32.xlu1 %v3310_v38, %s2964_s9  ;;  %v1390_v34 = vsel %vm1386_vm8, %v1357_v30, %v2270_v7  ;;  %v234_v58 = vld [vmem:[%s3051_s5 + $0x130] sm:$0x3]  ;;  %v360_v9 = vrot.slane %v233_v57, 1 }
  0xab   : > { %2572 = vrot.lane.b32.xlu0 %v3237_v45, %s2964_s9  ;;  %v1423_v42 = vsel %vm1419_vm9, %v1390_v34, %v2280_v18  ;;  %v1455_v49 = vsel %vm1452_vm10, %v1422_v36, %v2289_v27  ;;  %v362_v8 = vrot.slane %v234_v58, 1  ;;  %v440_v7 = vrot.slane %v232_v61, 2 }
  0xac   : > { %v3350_v20 = vpop.permute.xlu1 %2297  ;;  %v1453_v22 = vsel %vm1452_vm10, %v1420_v24, %v2284_v11  ;;  %v1454_v28 = vsel %vm1452_vm10, %v1421_v25, %v2285_v10  ;;  %v1456_v2 = vsel %vm1452_vm10, %v1423_v42, %v2290_v26  ;;  %v3405_v10 = vld [vmem:[%s3051_s5 + $0x138] sm:$0xff]  ;;  %v3411_v11 = vpack.i.bf16 %v439_v40, %v437_v3 }
  0xad   : > { %v2293_v21 = vpop.permute.xlu0 %2292  ;;  %v361_v17 = vsel %vm298_vm1, %v359_v0, %v360_v9  ;;  %v363_v18 = vsel %vm298_vm1, %v360_v9, %v362_v8  ;;  %v441_v19 = vrot.slane %v233_v57, 2  ;;  %v3432_v24 = vpack.i.bf16 %v233_v57, %v232_v61 }
  0xae   : > { %v2295_v45 = vunpack.i.h.bf16 %v2293_v21  ;;  %v2294_v23 = vunpack.i.l.bf16 %v2293_v21  ;;  %2587 = vrot.lane.b32.xlu1 %v3312_v39, %s2965_s12  ;;  %v364_v21 = vrot.slane %v3405_v10, 1  ;;  %v3434_v25 = vpack.i.bf16 %v363_v18, %v361_v17 }
  0xaf   : > { %2582 = vrot.lane.b32.xlu0 %v3254_v60, %s2965_s12  ;;  %v2300_v26 = vunpack.i.h.bf16 %v3350_v20  ;;  %v3443_v30 = vpack.i.bf16 %v3414_v13, %v3405_v10 }
  0xb0   : > { %v1486_v31 = vsel %vm1485_vm11, %v1453_v22, %v2294_v23  ;;  %v1487_v32 = vsel %vm1485_vm11, %v1454_v28, %v2295_v45  ;;  %v3366_v5 = vpop.permute.xlu1 %2307  ;;  %v365_v45 = vrot.slane %v3414_v13, 1  ;;  %v367_v23 = vrot.slane %v3417_v14, 1 }
  0xb1   : > { %v2303_v35 = vpop.permute.xlu0 %2302  ;;  %v1519_v60 = vsel %vm1518_vm12, %v1486_v31, 1.0  ;;  %v1520_v37 = vsel %vm1518_vm12, %v1487_v32, 1.0  ;;  %v442_v28 = vsel %vm379_vm0, %v440_v7, %v441_v19  ;;  %v2310_v31 = vunpack.i.h.bf16 %v3366_v5 }
  0xb2   : > { %v2305_v43 = vunpack.i.h.bf16 %v2303_v35  ;;  %v2304_v4 = vunpack.i.l.bf16 %v2303_v35  ;;  %2597 = vrot.lane.b32.xlu1 %v3302_v6, %s2966_s20  ;;  %v1551_v50 = vpack.c.bf16 %v1520_v37, %v1519_v60  ;;  %v2309_v32 = vunpack.i.l.bf16 %v3366_v5 }
  0xb3   : > { %2592 = vrot.lane.b32.xlu0 %v3269_v12, %s2966_s20  ;;  %v366_v33 = vsel %vm298_vm1, %v364_v21, %v365_v45  ;;  %v368_v34 = vsel %vm298_vm1, %v365_v45, %v367_v23  ;;  %v2299_v35 = vunpack.i.l.bf16 %v3350_v20  ;;  %v1260_v20 = vsel %vm1254_vm4, %v3055_v1, %v2300_v26  ;;  %v2872_v1 = vld [vmem:[%s3051_s5 + $0x30] sm:$0xff] }
  0xb4   : > { %v1488_v52 = vsel %vm1485_vm11, %v1455_v49, %v2304_v4  ;;  %v1489_v53 = vsel %vm1485_vm11, %v1456_v2, %v2305_v43  ;;  %2118 = vmatprep.mubr.msk.bf16.mxu0 %vm1587_vm13, %v1551_v50  ;;  %v3384_v55 = vpop.permute.xlu1 %2317  ;;  %v3466_v50 = vpack.i.bf16 %v368_v34, %v366_v33  ;;  %v1261_v51 = vsel %vm1254_vm4, %v3107_v46, %v2309_v32 }
  0xb5   : > { %v3386_v44 = vpop.permute.xlu0 %2312  ;;  %v1521_v56 = vsel %vm1518_vm12, %v1488_v52, 1.0  ;;  %v1522_v12 = vsel %vm1518_vm12, %v1489_v53, 1.0  ;;  %v2320_v60 = vunpack.i.h.bf16 %v3384_v55  ;;  %v2319_v37 = vunpack.i.l.bf16 %v3384_v55 }
  0xb6   : > { %2607 = vrot.lane.b32.xlu1 %v3316_v48, %s2967_s22  ;;  %v1552_v62 = vpack.c.bf16 %v1522_v12, %v1521_v56  ;;  %v2315_v36 = vunpack.i.h.bf16 %v3386_v44  ;;  %v2314_v5 = vunpack.i.l.bf16 %v3386_v44  ;;  %v1259_v54 = vsel %vm1254_vm4, %v2872_v1, %v2299_v35 }
  0xb7   : > { %2602 = vrot.lane.b32.xlu0 %v3310_v38, %s2967_s22  ;;  %v1294_v41 = vsel %vm1287_vm5, %v1261_v51, %v2319_v37 }
  0xb8   : > { %2119 = vmatmul.mubr.msk.bf16.vlgmr.msra.gmra.mrb[0].mxu0 %vm1587_vm13, %v1552_v62  ;;  %v3400_v59 = vpop.permute.xlu1 %2327  ;;  %v1292_v46 = vsel %vm1287_vm5, %v1259_v54, %v2314_v5  ;;  %v445_v54 = vrot.slane %v3405_v10, 2  ;;  %v239_v10 = vld [vmem:[%s3051_s5 + $0x158] sm:$0xff] }
  0xb9   : > { %v3402_v63 = vpop.permute.xlu0 %2322  ;;  %v2330_v43 = vunpack.i.h.bf16 %v3400_v59  ;;  %v2329_v4 = vunpack.i.l.bf16 %v3400_v59 }
  0xba   : > { %2617 = vrot.lane.b32.xlu1 %v3310_v38, %s2963_s8  ;;  %v443_v38 = vrot.slane %v234_v58, 2  ;;  %v2325_v52 = vunpack.i.h.bf16 %v3402_v63  ;;  %v2324_v53 = vunpack.i.l.bf16 %v3402_v63 }
  0xbb   : > { %2612 = vrot.lane.b32.xlu0 %v3312_v39, %s2968_s23  ;;  %v1327_v12 = vsel %vm1320_vm6, %v1294_v41, %v2329_v4 }
  0xbc   : > { %v3419_v15 = vpop.permute.xlu1 %2337  ;;  %v444_v29 = vsel %vm379_vm0, %v441_v19, %v443_v38  ;;  %v1325_v40 = vsel %vm1320_vm6, %v1292_v46, %v2324_v53  ;;  %v448_v46 = vrot.slane %v3417_v14, 2 }
  0xbd   : > { %v3421_v16 = vpop.permute.xlu0 %2332  ;;  %v3458_v42 = vpack.i.bf16 %v444_v29, %v442_v28  ;;  %v2340_v0 = vunpack.i.h.bf16 %v3419_v15  ;;  %v2339_v9 = vunpack.i.l.bf16 %v3419_v15 }
  0xbe   : > { %2627 = vrot.lane.b32.xlu1 %v3316_v48, %s2963_s8  ;;  %v2335_v44 = vunpack.i.h.bf16 %v3421_v16  ;;  %v2334_v56 = vunpack.i.l.bf16 %v3421_v16 }
  0xbf   : > { %2622 = vrot.lane.b32.xlu0 %v3411_v11, %s2968_s23  ;;  %v1360_v34 = vsel %vm1353_vm7, %v1327_v12, %v2339_v9 }
  0xc0   : > { %v3437_v27 = vpop.permute.xlu1 %2347  ;;  %v1358_v16 = vsel %vm1353_vm7, %v1325_v40, %v2334_v56 }
  0xc1   : > { %v2343_v22 = vpop.permute.xlu0 %2342  ;;  %v2350_v18 = vunpack.i.h.bf16 %v3437_v27  ;;  %v2349_v19 = vunpack.i.l.bf16 %v3437_v27 }
  0xc2   : > { %2637 = vrot.lane.b32.xlu1 %v3411_v11, %s2962_s7  ;;  %v2345_v57 = vunpack.i.h.bf16 %v2343_v22  ;;  %v2344_v58 = vunpack.i.l.bf16 %v2343_v22 }
  0xc3   : > { %2632 = vrot.lane.b32.xlu0 %v3312_v39, %s2962_s7  ;;  %v1262_v39 = vsel %vm1254_vm4, %v3110_v47, %v2310_v31  ;;  %v1293_v47 = vsel %vm1287_vm5, %v1260_v20, %v2315_v36  ;;  %v1393_v36 = vsel %vm1386_vm8, %v1360_v34, %v2349_v19 }
  0xc4   : > { %v3464_v49 = vpop.permute.xlu1 %2357  ;;  %v1295_v55 = vsel %vm1287_vm5, %v1262_v39, %v2320_v60  ;;  %v1391_v38 = vsel %vm1386_vm8, %v1358_v16, %v2344_v58  ;;  %v3565_v16 = vld [vmem:[%s3051_s5 + $0x178] sm:$0x3] }
  0xc5   : > { %v2353_v2 = vpop.permute.xlu0 %2352  ;;  %v1328_v61 = vsel %vm1320_vm6, %v1295_v55, %v2330_v43  ;;  %v2360_v21 = vunpack.i.h.bf16 %v3464_v49  ;;  %v2359_v45 = vunpack.i.l.bf16 %v3464_v49 }
  0xc6   : > { %2647 = vrot.lane.b32.xlu1 %v3432_v24, %s2961_s6  ;;  %v2355_v59 = vunpack.i.h.bf16 %v2353_v2  ;;  %v2354_v63 = vunpack.i.l.bf16 %v2353_v2  ;;  %v1361_v35 = vsel %vm1353_vm7, %v1328_v61, %v2340_v0  ;;  %v238_v61 = vld [vmem:[%s3051_s5 + $0x150] sm:$0xff]  ;;  %v451_v0 = vrot.slane %v239_v10, 2 }
  0xc7   : > { %2642 = vrot.lane.b32.xlu0 %v3302_v6, %s2961_s6  ;;  %v1326_v6 = vsel %vm1320_vm6, %v1293_v47, %v2325_v52  ;;  %v1394_v5 = vsel %vm1386_vm8, %v1361_v35, %v2350_v18  ;;  %v446_v47 = vrot.slane %v3414_v13, 2 }
  0xc8   : > { %v2368_v62 = vpop.permute.xlu1 %2367  ;;  %v1359_v17 = vsel %vm1353_vm7, %v1326_v6, %v2335_v44  ;;  %v1427_v2 = vsel %vm1419_vm9, %v1394_v5, %v2360_v21 }
  0xc9   : > { %v2363_v3 = vpop.permute.xlu0 %2362  ;;  %v1392_v15 = vsel %vm1386_vm8, %v1359_v17, %v2345_v57  ;;  %v2370_v31 = vunpack.i.h.bf16 %v2368_v62  ;;  %v2369_v32 = vunpack.i.l.bf16 %v2368_v62  ;;  %v240_v57 = vld [vmem:[%s3051_s5 + $0x160] sm:$0x3]  ;;  %v447_v14 = vsel %vm379_vm0, %v445_v54, %v446_v47  ;;  %v2875_v54 = vld [vmem:[%s3051_s5 + $0x78] sm:$0xff] }
  0xca   : > { %v2365_v8 = vunpack.i.h.bf16 %v2363_v3  ;;  %v2364_v7 = vunpack.i.l.bf16 %v2363_v3  ;;  %2657 = vrot.lane.b32.xlu1 %v3434_v25, %s2964_s9  ;;  %v1425_v22 = vsel %vm1419_vm9, %v1392_v15, %v2355_v59  ;;  %v449_v58 = vsel %vm379_vm0, %v446_v47, %v448_v46  ;;  %v2876_v46 = vld [vmem:[%s3051_s5 + $0x60] sm:$0xff] }
  0xcb   : > { %2652 = vrot.lane.b32.xlu0 %v3316_v48, %s2964_s9  ;;  %v1424_v48 = vsel %vm1419_vm9, %v1391_v38, %v2354_v63  ;;  %v1460_v53 = vsel %vm1452_vm10, %v1427_v2, %v2370_v31  ;;  %v369_v62 = vrot.slane %v238_v61, 1  ;;  %v370_v3 = vrot.slane %v239_v10, 1 }
  0xcc   : > { %v3504_v23 = vpop.permute.xlu1 %2377  ;;  %v1457_v27 = vsel %vm1452_vm10, %v1424_v48, %v2364_v7  ;;  %v1458_v33 = vsel %vm1452_vm10, %v1425_v22, %v2365_v8  ;;  %v372_v59 = vrot.slane %v240_v57, 1  ;;  %v450_v63 = vrot.slane %v238_v61, 2  ;;  %v3559_v8 = vld [vmem:[%s3051_s5 + $0x168] sm:$0xff]  ;;  %v3562_v7 = vld [vmem:[%s3051_s5 + $0x170] sm:$0xff] }
  0xcd   : > { %v2373_v26 = vpop.permute.xlu0 %2372  ;;  %v453_v9 = vrot.slane %v240_v57, 2  ;;  %v3571_v17 = vpack.i.bf16 %v449_v58, %v447_v14  ;;  %v371_v18 = vsel %vm298_vm1, %v369_v62, %v370_v3  ;;  %v374_v21 = vrot.slane %v3559_v8, 1 }
  0xce   : > { %v2375_v28 = vunpack.i.h.bf16 %v2373_v26  ;;  %v2374_v29 = vunpack.i.l.bf16 %v2373_v26  ;;  %2667 = vrot.lane.b32.xlu1 %v3458_v42, %s2965_s12  ;;  %v373_v15 = vsel %vm298_vm1, %v370_v3, %v372_v59  ;;  %v377_v26 = vrot.slane %v3565_v16, 1 }
  0xcf   : > { %2662 = vrot.lane.b32.xlu0 %v3411_v11, %s2965_s12  ;;  %v1426_v11 = vsel %vm1419_vm9, %v1393_v36, %v2359_v45  ;;  %v375_v45 = vrot.slane %v3562_v7, 1  ;;  %v454_v48 = vsel %vm379_vm0, %v451_v0, %v453_v9  ;;  %v3588_v22 = vpack.i.bf16 %v239_v10, %v238_v61 }
  0xd0   : > { %v1490_v60 = vsel %vm1485_vm11, %v1457_v27, %v2374_v29  ;;  %v1491_v37 = vsel %vm1485_vm11, %v1458_v33, %v2375_v28  ;;  %v3522_v4 = vpop.permute.xlu1 %2387  ;;  %v1459_v52 = vsel %vm1452_vm10, %v1426_v11, %v2369_v32  ;;  %v3590_v28 = vpack.i.bf16 %v373_v15, %v371_v18  ;;  %v2873_v11 = vld [vmem:[%s3051_s5 + $0x68] sm:$0xff] }
  0xd1   : > { %v1523_v20 = vsel %vm1518_vm12, %v1490_v60, 1.0  ;;  %v1524_v43 = vsel %vm1518_vm12, %v1491_v37, 1.0  ;;  %v2383_v49 = vpop.permute.xlu0 %2382  ;;  %v2380_v29 = vunpack.i.h.bf16 %v3504_v23  ;;  %v376_v33 = vsel %vm298_vm1, %v374_v21, %v375_v45 }
  0xd2   : > { %v2385_v39 = vunpack.i.h.bf16 %v2383_v49  ;;  %v2384_v51 = vunpack.i.l.bf16 %v2383_v49  ;;  %2677 = vrot.lane.b32.xlu1 %v3443_v30, %s2966_s20  ;;  %v1553_v1 = vpack.c.bf16 %v1524_v43, %v1523_v20  ;;  %v378_v34 = vsel %vm298_vm1, %v375_v45, %v377_v26 }
  0xd3   : > { %2672 = vrot.lane.b32.xlu0 %v3432_v24, %s2966_s20  ;;  %v2390_v35 = vunpack.i.h.bf16 %v3522_v4  ;;  %v2389_v60 = vunpack.i.l.bf16 %v3522_v4  ;;  %v3603_v37 = vpack.i.bf16 %v3562_v7, %v3559_v8  ;;  %v2379_v36 = vunpack.i.l.bf16 %v3504_v23 }
  0xd4   : > { %v1493_v41 = vsel %vm1485_vm11, %v1460_v53, %v2385_v39  ;;  %v1492_v55 = vsel %vm1485_vm11, %v1459_v52, %v2384_v51  ;;  %2122 = vmatprep.mubr.msk.bf16.mxu0 %vm1587_vm13, %v1553_v1  ;;  %v3540_v12 = vpop.permute.xlu1 %2397  ;;  %v3614_v49 = vpack.i.bf16 %v378_v34, %v376_v33  ;;  %v1264_v23 = vsel %vm1254_vm4, %v2873_v11, %v2380_v29 }
  0xd5   : > { %v1526_v44 = vsel %vm1518_vm12, %v1493_v41, 1.0  ;;  %v1525_v56 = vsel %vm1518_vm12, %v1492_v55, 1.0  ;;  %v3542_v24 = vpop.permute.xlu0 %2392  ;;  %v2400_v5 = vunpack.i.h.bf16 %v3540_v12  ;;  %v2399_v20 = vunpack.i.l.bf16 %v3540_v12 }
  0xd6   : > { %2687 = vrot.lane.b32.xlu1 %v3466_v50, %s2967_s22  ;;  %v1554_v13 = vpack.c.bf16 %v1526_v44, %v1525_v56  ;;  %v2395_v43 = vunpack.i.h.bf16 %v3542_v24  ;;  %v2394_v4 = vunpack.i.l.bf16 %v3542_v24  ;;  %v455_v53 = vrot.slane %v3559_v8, 2  ;;  %v3722_v8 = vld [vmem:[%s3051_s5 + $0x1a0] sm:$0xff] }
  0xd7   : > { %2682 = vrot.lane.b32.xlu0 %v3434_v25, %s2967_s22  ;;  %v1265_v41 = vsel %vm1254_vm4, %v2875_v54, %v2389_v60  ;;  %v1263_v44 = vsel %vm1254_vm4, %v2876_v46, %v2379_v36  ;;  %v456_v24 = vrot.slane %v3562_v7, 2 }
  0xd8   : > { %2123 = vmatmul.mubr.msk.bf16.gmra.mrb[4].mxu0 %vm1587_vm13, %v1554_v13  ;;  %v3554_v40 = vpop.permute.xlu1 %2407  ;;  %v1298_v56 = vsel %vm1287_vm5, %v1265_v41, %v2399_v20  ;;  %v1297_v61 = vsel %vm1287_vm5, %v1264_v23, %v2395_v43  ;;  %v1296_v10 = vsel %vm1287_vm5, %v1263_v44, %v2394_v4 }
  0xd9   : > { %v3556_v6 = vpop.permute.xlu0 %2402  ;;  %v2410_v2 = vunpack.i.h.bf16 %v3554_v40  ;;  %v2409_v39 = vunpack.i.l.bf16 %v3554_v40 }
  0xda   : > { %2697 = vrot.lane.b32.xlu1 %v3434_v25, %s2963_s8  ;;  %v452_v25 = vsel %vm379_vm0, %v450_v63, %v451_v0  ;;  %v2405_v55 = vunpack.i.h.bf16 %v3556_v6  ;;  %v2404_v47 = vunpack.i.l.bf16 %v3556_v6 }
  0xdb   : > { %2692 = vrot.lane.b32.xlu0 %v3458_v42, %s2968_s23  ;;  %v3595_v27 = vpack.i.bf16 %v454_v48, %v452_v25  ;;  %v1331_v14 = vsel %vm1320_vm6, %v1298_v56, %v2409_v39 }
  0xdc   : > { %v3574_v19 = vpop.permute.xlu1 %2417  ;;  %v1330_v59 = vsel %vm1320_vm6, %v1297_v61, %v2405_v55 }
  0xdd   : > { %v3576_v38 = vpop.permute.xlu0 %2412  ;;  %v2420_v9 = vunpack.i.h.bf16 %v3574_v19  ;;  %v2419_v18 = vunpack.i.l.bf16 %v3574_v19 }
  0xde   : > { %2707 = vrot.lane.b32.xlu1 %v3466_v50, %s2963_s8  ;;  %v2415_v57 = vunpack.i.h.bf16 %v3576_v38  ;;  %v2414_v13 = vunpack.i.l.bf16 %v3576_v38 }
  0xdf   : > { %2702 = vrot.lane.b32.xlu0 %v3571_v17, %s2968_s23  ;;  %v1364_v4 = vsel %vm1353_vm7, %v1331_v14, %v2419_v18 }
  0xe0   : > { %v3593_v31 = vpop.permute.xlu1 %2427  ;;  %v1363_v45 = vsel %vm1353_vm7, %v1330_v59, %v2415_v57  ;;  %v244_v57 = vld [vmem:[%s3051_s5 + $0x180] sm:$0xff] }
  0xe1   : > { %v2423_v32 = vpop.permute.xlu0 %2422  ;;  %v2430_v26 = vunpack.i.h.bf16 %v3593_v31  ;;  %v2429_v25 = vunpack.i.l.bf16 %v3593_v31 }
  0xe2   : > { %2717 = vrot.lane.b32.xlu1 %v3571_v17, %s2962_s7  ;;  %v2425_v62 = vunpack.i.h.bf16 %v2423_v32  ;;  %v2424_v3 = vunpack.i.l.bf16 %v2423_v32 }
  0xe3   : > { %2712 = vrot.lane.b32.xlu0 %v3458_v42, %s2962_s7  ;;  %v2874_v42 = vld [vmem:[%s3051_s5 + $0x80] sm:$0xff]  ;;  %v1397_v39 = vsel %vm1386_vm8, %v1364_v4, %v2429_v25 }
  0xe4   : > { %v3620_v51 = vpop.permute.xlu1 %2437  ;;  %v1266_v1 = vsel %vm1254_vm4, %v2874_v42, %v2390_v35  ;;  %v1396_v19 = vsel %vm1386_vm8, %v1363_v45, %v2425_v62 }
  0xe5   : > { %v2433_v52 = vpop.permute.xlu0 %2432  ;;  %v1299_v12 = vsel %vm1287_vm5, %v1266_v1, %v2400_v5  ;;  %v2440_v29 = vunpack.i.h.bf16 %v3620_v51  ;;  %v2439_v32 = vunpack.i.l.bf16 %v3620_v51 }
  0xe6   : > { %2727 = vrot.lane.b32.xlu1 %v3588_v22, %s2961_s6  ;;  %v1332_v58 = vsel %vm1320_vm6, %v1299_v12, %v2410_v2  ;;  %v2435_v63 = vunpack.i.h.bf16 %v2433_v52  ;;  %v2434_v0 = vunpack.i.l.bf16 %v2433_v52  ;;  %v458_v12 = vrot.slane %v3565_v16, 2 }
  0xe7   : > { %2722 = vrot.lane.b32.xlu0 %v3443_v30, %s2961_s6  ;;  %v1329_v30 = vsel %vm1320_vm6, %v1296_v10, %v2404_v47  ;;  %v1365_v11 = vsel %vm1353_vm7, %v1332_v58, %v2420_v9  ;;  %v1430_v54 = vsel %vm1419_vm9, %v1397_v39, %v2439_v32 }
  0xe8   : > { %v2448_v40 = vpop.permute.xlu1 %2447  ;;  %v1362_v21 = vsel %vm1353_vm7, %v1329_v30, %v2414_v13  ;;  %v1429_v35 = vsel %vm1419_vm9, %v1396_v19, %v2435_v63  ;;  %v1398_v51 = vsel %vm1386_vm8, %v1365_v11, %v2430_v26  ;;  %v463_v30 = vrot.slane %v244_v57, 1 }
  0xe9   : > { %v2443_v6 = vpop.permute.xlu0 %2442  ;;  %v1395_v48 = vsel %vm1386_vm8, %v1362_v21, %v2424_v3  ;;  %v2450_v5 = vunpack.i.h.bf16 %v2448_v40  ;;  %v2449_v20 = vunpack.i.l.bf16 %v2448_v40  ;;  %v1431_v41 = vsel %vm1419_vm9, %v1398_v51, %v2440_v29  ;;  %v245_v3 = vld [vmem:[%s3051_s5 + $0x188] sm:$0xff]  ;;  %v3719_v21 = vld [vmem:[%s3051_s5 + $0x198] sm:$0xff] }
  0xea   : > { %v2445_v15 = vunpack.i.h.bf16 %v2443_v6  ;;  %v2444_v38 = vunpack.i.l.bf16 %v2443_v6  ;;  %2737 = vrot.lane.b32.xlu1 %v3590_v28, %s2964_s9  ;;  %v457_v40 = vsel %vm379_vm0, %v455_v53, %v456_v24  ;;  %v459_v6 = vsel %vm379_vm0, %v456_v24, %v458_v12  ;;  %v3725_v53 = vld [vmem:[%s3051_s5 + $0x1a8] sm:$0x3] }
  0xeb   : > { %2732 = vrot.lane.b32.xlu0 %v3466_v50, %s2964_s9  ;;  %v1428_v50 = vsel %vm1419_vm9, %v1395_v48, %v2434_v0  ;;  %v1463_v46 = vsel %vm1452_vm10, %v1430_v54, %v2449_v20  ;;  %v1464_v44 = vsel %vm1452_vm10, %v1431_v41, %v2450_v5  ;;  %v464_v59 = vrot.slane %v245_v3, 1 }
  0xec   : > { %v3660_v33 = vpop.permute.xlu1 %2457  ;;  %v1461_v31 = vsel %vm1452_vm10, %v1428_v50, %v2444_v38  ;;  %v1462_v43 = vsel %vm1452_vm10, %v1429_v35, %v2445_v15  ;;  %v468_v0 = vrot.slane %v244_v57, 2  ;;  %v469_v9 = vrot.slane %v245_v3, 2 }
  0xed   : > { %v2453_v34 = vpop.permute.xlu0 %2452  ;;  %v3731_v7 = vpack.i.bf16 %v459_v6, %v457_v40  ;;  %v465_v24 = vsel %vm298_vm1, %v463_v30, %v464_v59  ;;  %v477_v29 = vrot.slane %v3722_v8, 1  ;;  %v479_v32 = vrot.slane %v3725_v53, 1 }
  0xee   : > { %v2455_v60 = vunpack.i.h.bf16 %v2453_v34  ;;  %v2454_v36 = vunpack.i.l.bf16 %v2453_v34  ;;  %2747 = vrot.lane.b32.xlu1 %v3595_v27, %s2965_s12  ;;  %v470_v26 = vsel %vm379_vm0, %v468_v0, %v469_v9  ;;  %v3748_v34 = vpack.i.bf16 %v245_v3, %v244_v57  ;;  %v2880_v57 = vld [vmem:[%s3051_s5 + $0x90] sm:$0xff] }
  0xef   : > { %2742 = vrot.lane.b32.xlu0 %v3571_v17, %s2965_s12  ;;  %v2836_v11 = vpack.i.bf16 %v3722_v8, %v3719_v21  ;;  %v482_v51 = vrot.slane %v3722_v8, 2 }
  0xf0   : > { %v1494_v23 = vsel %vm1485_vm11, %v1461_v31, %v2454_v36  ;;  %v1495_v2 = vsel %vm1485_vm11, %v1462_v43, %v2455_v60  ;;  %v3678_v1 = vpop.permute.xlu1 %2467  ;;  %v2460_v60 = vunpack.i.h.bf16 %v3660_v33  ;;  %v3761_v31 = vsel %vm298_vm1, %v477_v29, %v479_v32 }
  0xf1   : > { %v1527_v52 = vsel %vm1518_vm12, %v1494_v23, 1.0  ;;  %v1528_v42 = vsel %vm1518_vm12, %v1495_v2, 1.0  ;;  %v2463_v17 = vpop.permute.xlu0 %2462  ;;  %v2470_v43 = vunpack.i.h.bf16 %v3678_v1  ;;  %v2469_v4 = vunpack.i.l.bf16 %v3678_v1 }
  0xf2   : > { %v2465_v55 = vunpack.i.h.bf16 %v2463_v17  ;;  %v2464_v47 = vunpack.i.l.bf16 %v2463_v17  ;;  %2757 = vrot.lane.b32.xlu1 %v3603_v37, %s2966_s20  ;;  %v1555_v56 = vpack.c.bf16 %v1528_v42, %v1527_v52  ;;  %v2459_v23 = vunpack.i.l.bf16 %v3660_v33  ;;  %v2877_v17 = vld [vmem:[%s3051_s5 + $0x98] sm:$0xff] }
  0xf3   : > { %2752 = vrot.lane.b32.xlu0 %v3588_v22, %s2966_s20  ;;  %v246_v22 = vld [vmem:[%s3051_s5 + $0x190] sm:$0x3]  ;;  %v481_v33 = vrot.slane %v3719_v21, 2  ;;  %v1268_v54 = vsel %vm1254_vm4, %v2877_v17, %v2460_v60 }
  0xf4   : > { %v1497_v61 = vsel %vm1485_vm11, %v1464_v44, %v2465_v55  ;;  %v1496_v10 = vsel %vm1485_vm11, %v1463_v46, %v2464_v47  ;;  %2126 = vmatprep.mubr.msk.bf16.mxu0 %vm1587_vm13, %v1555_v56  ;;  %v3695_v58 = vpop.permute.xlu1 %2477  ;;  %v466_v63 = vrot.slane %v246_v22, 1  ;;  %v471_v38 = vrot.slane %v246_v22, 2  ;;  %v2878_v46 = vld [vmem:[%s3051_s5 + $0xb0] sm:$0xff]  ;;  %v2879_v56 = vld [vmem:[%s3051_s5 + $0xa8] sm:$0xff] }
  0xf5   : > { %v1530_v13 = vsel %vm1518_vm12, %v1497_v61, 1.0  ;;  %v1529_v14 = vsel %vm1518_vm12, %v1496_v10, 1.0  ;;  %v3697_v62 = vpop.permute.xlu0 %2472  ;;  %v2480_v2 = vunpack.i.h.bf16 %v3695_v58  ;;  %v2479_v39 = vunpack.i.l.bf16 %v3695_v58 }
  0xf6   : > { %2767 = vrot.lane.b32.xlu1 %v3614_v49, %s2967_s22  ;;  %v1556_v16 = vpack.c.bf16 %v1530_v13, %v1529_v14  ;;  %v467_v45 = vsel %vm298_vm1, %v464_v59, %v466_v63  ;;  %v472_v19 = vsel %vm379_vm0, %v469_v9, %v471_v38  ;;  %v2475_v52 = vunpack.i.h.bf16 %v3697_v62 }
  0xf7   : > { %2762 = vrot.lane.b32.xlu0 %v3590_v28, %s2967_s22  ;;  %v3750_v50 = vpack.i.bf16 %v467_v45, %v465_v24  ;;  %v3752_v35 = vpack.i.bf16 %v472_v19, %v470_v26  ;;  %v2474_v42 = vunpack.i.l.bf16 %v3697_v62  ;;  %v1270_v44 = vsel %vm1254_vm4, %v2878_v46, %v2470_v43 }
  0xf8   : > { %2127 = vmatmul.mubr.msk.bf16.gmra.mrb[8].mxu0 %vm1587_vm13, %v1556_v16  ;;  %v3714_v18 = vpop.permute.xlu1 %2487  ;;  %v1269_v12 = vsel %vm1254_vm4, %v2879_v56, %v2469_v4  ;;  %v1267_v13 = vsel %vm1254_vm4, %v2880_v57, %v2459_v23  ;;  %v1303_v58 = vsel %vm1287_vm5, %v1270_v44, %v2480_v2  ;;  %v484_v62 = vrot.slane %v3725_v53, 2 }
  0xf9   : > { %v3716_v15 = vpop.permute.xlu0 %2482  ;;  %v2490_v41 = vunpack.i.h.bf16 %v3714_v18  ;;  %v2489_v55 = vunpack.i.l.bf16 %v3714_v18  ;;  %v1302_v14 = vsel %vm1287_vm5, %v1269_v12, %v2479_v39  ;;  %v1301_v3 = vsel %vm1287_vm5, %v1268_v54, %v2475_v52 }
  0xfa   : > { %2777 = vrot.lane.b32.xlu1 %v3590_v28, %s2963_s8  ;;  %v476_v28 = vrot.slane %v3719_v21, 1  ;;  %v2485_v61 = vunpack.i.h.bf16 %v3716_v15  ;;  %v2484_v10 = vunpack.i.l.bf16 %v3716_v15  ;;  %v1300_v22 = vsel %vm1287_vm5, %v1267_v13, %v2474_v42 }
  0xfb   : > { %2772 = vrot.lane.b32.xlu0 %v3595_v27, %s2968_s23  ;;  %v1335_v6 = vsel %vm1320_vm6, %v1302_v14, %v2489_v55  ;;  %v1336_v30 = vsel %vm1320_vm6, %v1303_v58, %v2490_v41 }
  0xfc   : > { %v3736_v25 = vpop.permute.xlu1 %2497  ;;  %v3758_v20 = vsel %vm298_vm1, %v476_v28, %v477_v29  ;;  %v1334_v18 = vsel %vm1320_vm6, %v1301_v3, %v2485_v61 }
  0xfd   : > { %v3738_v48 = vpop.permute.xlu0 %2492  ;;  %v2846_v1 = vpack.i.bf16 %v3761_v31, %v3758_v20  ;;  %v2500_v24 = vunpack.i.h.bf16 %v3736_v25  ;;  %v2499_v45 = vunpack.i.l.bf16 %v3736_v25 }
  0xfe   : > { %2787 = vrot.lane.b32.xlu1 %v3614_v49, %s2963_s8  ;;  %v2495_v16 = vunpack.i.h.bf16 %v3738_v48  ;;  %v2494_v40 = vunpack.i.l.bf16 %v3738_v48 }
  0xff   : > { %2782 = vrot.lane.b32.xlu0 %v3731_v7, %s2968_s23  ;;  %v1368_v41 = vsel %vm1353_vm7, %v1335_v6, %v2499_v45  ;;  %v1369_v55 = vsel %vm1353_vm7, %v1336_v30, %v2500_v24  ;;  %v483_v6 = vsel %vm379_vm0, %v481_v33, %v482_v51 }
 0x100   : > { %v3755_v36 = vpop.permute.xlu1 %2507  ;;  %v1367_v29 = vsel %vm1353_vm7, %v1334_v18, %v2495_v16 }
 0x101   : > { %v2503_v5 = vpop.permute.xlu0 %2502  ;;  %v2510_v28 = vunpack.i.h.bf16 %v3755_v36  ;;  %v2509_v32 = vunpack.i.l.bf16 %v3755_v36 }
 0x102   : > { %2797 = vrot.lane.b32.xlu1 %v3731_v7, %s2962_s7  ;;  %v2505_v59 = vunpack.i.h.bf16 %v2503_v5  ;;  %v2504_v63 = vunpack.i.l.bf16 %v2503_v5 }
 0x103   : > { %2792 = vrot.lane.b32.xlu0 %v3595_v27, %s2962_s7  ;;  %v1401_v46 = vsel %vm1386_vm8, %v1368_v41, %v2509_v32  ;;  %v1402_v44 = vsel %vm1386_vm8, %v1369_v55, %v2510_v28 }
 0x104   : > { %v3784_v27 = vpop.permute.xlu1 %2517  ;;  %v1400_v25 = vsel %vm1386_vm8, %v1367_v29, %v2505_v59  ;;  %v2882_v29 = vld [vmem:[%s3051_s5 + $0xd8] sm:$0xff] }
 0x105   : > { %v2513_v47 = vpop.permute.xlu0 %2512  ;;  %v2520_v5 = vunpack.i.h.bf16 %v3784_v27  ;;  %v2519_v43 = vunpack.i.l.bf16 %v3784_v27 }
 0x106   : > { %2807 = vrot.lane.b32.xlu1 %v3748_v34, %s2961_s6  ;;  %v2515_v15 = vunpack.i.h.bf16 %v2513_v47  ;;  %v2514_v38 = vunpack.i.l.bf16 %v2513_v47 }
 0x107   : > { %2802 = vrot.lane.b32.xlu0 %v3603_v37, %s2961_s6  ;;  %v1333_v37 = vsel %vm1320_vm6, %v1300_v22, %v2484_v10  ;;  %v1435_v57 = vsel %vm1419_vm9, %v1402_v44, %v2520_v5  ;;  %s189_s6 = scalar_lea.vmem [#allocation2], %s188_s28 }
 0x108   : > { %v2528_v0 = vpop.permute.xlu1 %2527  ;;  %v1366_v19 = vsel %vm1353_vm7, %v1333_v37, %v2494_v40  ;;  %v1433_v2 = vsel %vm1419_vm9, %v1400_v25, %v2515_v15  ;;  %v2883_v25 = vld [vmem:[%s3051_s5 + $0xc8] sm:$0xff]  ;;  %s1994_s7 = sshll.u32 %s189_s6, 4  ;;  %s4124_s7 = int_to_ptr.vmem [resolvable:$true] %s1994_s7 }
 0x109   : > { %v2523_v9 = vpop.permute.xlu0 %2522  ;;  %v1399_v60 = vsel %vm1386_vm8, %v1366_v19, %v2504_v63  ;;  %v2530_v42 = vunpack.i.h.bf16 %v2528_v0  ;;  %v2529_v17 = vunpack.i.l.bf16 %v2528_v0 }
 0x10a   : > { %v2525_v26 = vunpack.i.h.bf16 %v2523_v9  ;;  %v2524_v48 = vunpack.i.l.bf16 %v2523_v9  ;;  %2817 = vrot.lane.b32.xlu1 %v3750_v50, %s2964_s9 }
 0x10b   : > { %2812 = vrot.lane.b32.xlu0 %v3614_v49, %s2964_s9  ;;  %v1432_v49 = vsel %vm1419_vm9, %v1399_v60, %v2514_v38  ;;  %v1468_v3 = vsel %vm1452_vm10, %v1435_v57, %v2530_v42 }
 0x10c   : > { %v3823_v4 = vpop.permute.xlu1 %2537  ;;  %v1465_v36 = vsel %vm1452_vm10, %v1432_v49, %v2524_v48  ;;  %v1466_v54 = vsel %vm1452_vm10, %v1433_v2, %v2525_v26  ;;  %v2881_v48 = vld [vmem:[%s3051_s5 + $0xe0] sm:$0xff] }
 0x10d   : > { %v2533_v23 = vpop.permute.xlu0 %2532  ;;  %v2540_v0 = vunpack.i.h.bf16 %v3823_v4  ;;  %v2539_v9 = vunpack.i.l.bf16 %v3823_v4 }
 0x10e   : > { %v2535_v39 = vunpack.i.h.bf16 %v2533_v23  ;;  %v2534_v52 = vunpack.i.l.bf16 %v2533_v23  ;;  %2827 = vrot.lane.b32.xlu1 %v3752_v35, %s2965_s12 }
 0x10f   : > { %2822 = vrot.lane.b32.xlu0 %v3731_v7, %s2965_s12  ;;  %v1434_v7 = vsel %vm1419_vm9, %v1401_v46, %v2519_v43  ;;  %v1272_v5 = vsel %vm1254_vm4, %v2883_v25, %v2540_v0  ;;  %v2884_v43 = vld [vmem:[%s3051_s5 + $0xc0] sm:$0xff]  ;;  %s2972_s12 = smov [#allocation2]  }
 0x110   : > { %v1498_v27 = vsel %vm1485_vm11, %v1465_v36, %v2534_v52  ;;  %v1499_v47 = vsel %vm1485_vm11, %v1466_v54, %v2535_v39  ;;  %v2548_v61 = vpop.permute.xlu1 %2547  ;;  %v1467_v58 = vsel %vm1452_vm10, %v1434_v7, %v2529_v17  ;;  %v1271_v4 = vsel %vm1254_vm4, %v2884_v43, %v2539_v9  ;;  %s2901_s13 = sshll.u32 %s2972_s12, 4  ;;  %s2902_s13 = int_to_ptr.vmem [resolvable:$false] %s2901_s13 }
 0x111   : > { %v1531_v56 = vsel %vm1518_vm12, %v1498_v27, 1.0  ;;  %v1532_v12 = vsel %vm1518_vm12, %v1499_v47, 1.0  ;;  %v2543_v10 = vpop.permute.xlu0 %2542  ;;  %s2903_s14 = scalar_lea.vmem %s2902_s13, 32  ;;  %p2904_p0 = scmp.lt.s32.totalorder %s4124_s7, %s2902_s13 }
 0x112   : > { %v2545_v13 = vunpack.i.h.bf16 %v2543_v10  ;;  %v2544_v14 = vunpack.i.l.bf16 %v2543_v10  ;;  %2837 = vrot.lane.b32.xlu1 %v2836_v11, %s2966_s20  ;;  %v1557_v22 = vpack.c.bf16 %v1532_v12, %v1531_v56  ;;  %v485_v11 = vsel %vm379_vm0, %v482_v51, %v484_v62 }
 0x113   : > { %2832 = vrot.lane.b32.xlu0 %v3748_v34, %s2966_s20  ;;  %v2856_v8 = vpack.i.bf16 %v485_v11, %v483_v6 }
 0x114   : > { %v1501_v16 = vsel %vm1485_vm11, %v1468_v3, %v2545_v13  ;;  %v1500_v40 = vsel %vm1485_vm11, %v1467_v58, %v2544_v14  ;;  %2130 = vmatprep.mubr.msk.bf16.mxu0 %vm1587_vm13, %v1557_v22  ;;  %v2558_v59 = vpop.permute.xlu1 %2557 }
 0x115   : > { %v1534_v30 = vsel %vm1518_vm12, %v1501_v16, 1.0  ;;  %v1533_v34 = vsel %vm1518_vm12, %v1500_v40, 1.0  ;;  %v2553_v63 = vpop.permute.xlu0 %2552  ;;  %v2560_v37 = vunpack.i.h.bf16 %v2558_v59  ;;  %v2559_v18 = vunpack.i.l.bf16 %v2558_v59 }
 0x116   : > { %2847 = vrot.lane.b32.xlu1 %v2846_v1, %s2967_s22  ;;  %v1558_v21 = vpack.c.bf16 %v1534_v30, %v1533_v34  ;;  %v2549_v1 = vunpack.i.l.bf16 %v2548_v61  ;;  %v2555_v15 = vunpack.i.h.bf16 %v2553_v63 }
 0x117   : > { %2842 = vrot.lane.b32.xlu0 %v3750_v50, %s2967_s22  ;;  %v2550_v50 = vunpack.i.h.bf16 %v2548_v61 }
 0x118   : > { %2131 = vmatmul.mubr.msk.bf16.gmra.mrb[12].mxu0 %vm1587_vm13, %v1558_v21  ;;  %v2568_v53 = vpop.permute.xlu1 %2567  ;;  %v1273_v28 = vsel %vm1254_vm4, %v2882_v29, %v2549_v1  ;;  %v1305_v2 = vsel %vm1287_vm5, %v1272_v5, %v2555_v15 }
 0x119   : > { %v2563_v51 = vpop.permute.xlu0 %2562  ;;  %v2570_v38 = vunpack.i.h.bf16 %v2568_v53  ;;  %v2569_v24 = vunpack.i.l.bf16 %v2568_v53  ;;  %v1274_v19 = vsel %vm1254_vm4, %v2881_v48, %v2550_v50  ;;  %v1306_v23 = vsel %vm1287_vm5, %v1273_v28, %v2559_v18 }
 0x11a   : > { %2857 = vrot.lane.b32.xlu1 %v2856_v8, %s2968_s23  ;;  %v2565_v32 = vunpack.i.h.bf16 %v2563_v51  ;;  %v2564_v60 = vunpack.i.l.bf16 %v2563_v51  ;;  %v1307_v49 = vsel %vm1287_vm5, %v1274_v19, %v2560_v37 }
 0x11b   : > { %2852 = vrot.lane.b32.xlu0 %v3752_v35, %s2968_s23  ;;  %v2554_v35 = vunpack.i.l.bf16 %v2553_v63  ;;  %v1339_v17 = vsel %vm1320_vm6, %v1306_v23, %v2569_v24  ;;  %v1340_v36 = vsel %vm1320_vm6, %v1307_v49, %v2570_v38 }
 0x11c   : > { %v3876_v33 = vpop.permute.xlu1 %2577  ;;  %v1338_v46 = vsel %vm1320_vm6, %v1305_v2, %v2565_v32 }
 0x11d   : > { %v2573_v62 = vpop.permute.xlu0 %2572  ;;  %v1304_v39 = vsel %vm1287_vm5, %v1271_v4, %v2554_v35  ;;  %v2580_v12 = vunpack.i.h.bf16 %v3876_v33  ;;  %v2579_v61 = vunpack.i.l.bf16 %v3876_v33 }
 0x11e   : > { %v2575_v52 = vunpack.i.h.bf16 %v2573_v62  ;;  %v2574_v42 = vunpack.i.l.bf16 %v2573_v62  ;;  %v1337_v47 = vsel %vm1320_vm6, %v1304_v39, %v2564_v60 }
 0x11f   : > { %v1372_v33 = vsel %vm1353_vm7, %v1339_v17, %v2579_v61  ;;  %v1373_v62 = vsel %vm1353_vm7, %v1340_v36, %v2580_v12  ;;  %v2885_v12 = vld [vmem:[%s3051_s5 + $0x110] sm:$0xff] }
 0x120   : > { %v3878_v20 = vpop.permute.xlu1 %2587  ;;  %v1370_v57 = vsel %vm1353_vm7, %v1337_v47, %v2574_v42  ;;  %v1371_v13 = vsel %vm1353_vm7, %v1338_v46, %v2575_v52 }
 0x121   : > { %v2583_v31 = vpop.permute.xlu0 %2582  ;;  %v2590_v14 = vunpack.i.h.bf16 %v3878_v20  ;;  %v2589_v58 = vunpack.i.l.bf16 %v3878_v20 }
 0x122   : > { %v2585_v54 = vunpack.i.h.bf16 %v2583_v31  ;;  %v2584_v41 = vunpack.i.l.bf16 %v2583_v31 }
 0x123   : > { %v1405_v50 = vsel %vm1386_vm8, %v1372_v33, %v2589_v58  ;;  %v1406_v1 = vsel %vm1386_vm8, %v1373_v62, %v2590_v14  ;;  %v2887_v14 = vld [vmem:[%s3051_s5 + $0xf8] sm:$0xff] }
 0x124   : > { %v3882_v45 = vpop.permute.xlu1 %2597  ;;  %v1403_v3 = vsel %vm1386_vm8, %v1370_v57, %v2584_v41  ;;  %v1404_v22 = vsel %vm1386_vm8, %v1371_v13, %v2585_v54 }
 0x125   : > { %v2593_v26 = vpop.permute.xlu0 %2592  ;;  %v2600_v16 = vunpack.i.h.bf16 %v3882_v45  ;;  %v2599_v40 = vunpack.i.l.bf16 %v3882_v45 }
 0x126   : > { %v2595_v44 = vunpack.i.h.bf16 %v2593_v26  ;;  %v2594_v56 = vunpack.i.l.bf16 %v2593_v26 }
 0x127   : > { %v1438_v15 = vsel %vm1419_vm9, %v1405_v50, %v2599_v40  ;;  %v1439_v35 = vsel %vm1419_vm9, %v1406_v1, %v2600_v16 }
 0x128   : > { %v2608_v55 = vpop.permute.xlu1 %2607  ;;  %v1436_v30 = vsel %vm1419_vm9, %v1403_v3, %v2594_v56  ;;  %v1437_v34 = vsel %vm1419_vm9, %v1404_v22, %v2595_v44  ;;  %v2888_v3 = vld [vmem:[%s3051_s5 + $0xf0] sm:$0xff] }
 0x129   : > { %v2603_v27 = vpop.permute.xlu0 %2602  ;;  %v2610_v21 = vunpack.i.h.bf16 %v2608_v55  ;;  %v2609_v8 = vunpack.i.l.bf16 %v2608_v55 }
 0x12a   : > { %v2605_v10 = vunpack.i.h.bf16 %v2603_v27  ;;  %v2604_v7 = vunpack.i.l.bf16 %v2603_v27 }
 0x12b   : > { %v1471_v45 = vsel %vm1452_vm10, %v1438_v15, %v2609_v8  ;;  %v1472_v26 = vsel %vm1452_vm10, %v1439_v35, %v2610_v21 }
 0x12c   : > { %v3910_v6 = vpop.permute.xlu1 %2617  ;;  %v1469_v53 = vsel %vm1452_vm10, %v1436_v30, %v2604_v7  ;;  %v1470_v51 = vsel %vm1452_vm10, %v1437_v34, %v2605_v10  ;;  %v2886_v10 = vld [vmem:[%s3051_s5 + $0x108] sm:$0xff] }
 0x12d   : > { %v2613_v11 = vpop.permute.xlu0 %2612  ;;  %v2620_v17 = vunpack.i.h.bf16 %v3910_v6  ;;  %v2619_v36 = vunpack.i.l.bf16 %v3910_v6 }
 0x12e   : > { %v2615_v59 = vunpack.i.h.bf16 %v2613_v11  ;;  %v2614_v63 = vunpack.i.l.bf16 %v2613_v11 }
 0x12f   : > { %v1276_v58 = vsel %vm1254_vm4, %v2887_v14, %v2620_v17  ;;  %v1275_v22 = vsel %vm1254_vm4, %v2888_v3, %v2619_v36 }
 0x130   : > { %v1502_v20 = vsel %vm1485_vm11, %v1469_v53, %v2614_v63  ;;  %v1503_v31 = vsel %vm1485_vm11, %v1470_v51, %v2615_v59  ;;  %v2628_v37 = vpop.permute.xlu1 %2627 }
 0x131   : > { %v1535_v0 = vsel %vm1518_vm12, %v1502_v20, 1.0  ;;  %v1536_v9 = vsel %vm1518_vm12, %v1503_v31, 1.0  ;;  %v2623_v18 = vpop.permute.xlu0 %2622  ;;  %v2630_v52 = vunpack.i.h.bf16 %v2628_v37  ;;  %v2629_v42 = vunpack.i.l.bf16 %v2628_v37 }
 0x132   : > { %v2625_v38 = vunpack.i.h.bf16 %v2623_v18  ;;  %v2624_v24 = vunpack.i.l.bf16 %v2623_v18  ;;  %v1559_v48 = vpack.c.bf16 %v1536_v9, %v1535_v0 }
 0x133   : > { %v1278_v61 = vsel %vm1254_vm4, %v2885_v12, %v2630_v52  ;;  %v1277_v7 = vsel %vm1254_vm4, %v2886_v10, %v2629_v42 }
 0x134   : > { %v1505_v19 = vsel %vm1485_vm11, %v1472_v26, %v2625_v38  ;;  %v1504_v29 = vsel %vm1485_vm11, %v1471_v45, %v2624_v24  ;;  %2134 = vmatprep.mubr.msk.bf16.mxu0 %vm1587_vm13, %v1559_v48  ;;  %v2638_v60 = vpop.permute.xlu1 %2637 }
 0x135   : > { %v1538_v28 = vsel %vm1518_vm12, %v1505_v19, 1.0  ;;  %v1537_v32 = vsel %vm1518_vm12, %v1504_v29, 1.0  ;;  %v2633_v25 = vpop.permute.xlu0 %2632  ;;  %v2640_v54 = vunpack.i.h.bf16 %v2638_v60  ;;  %v2639_v41 = vunpack.i.l.bf16 %v2638_v60 }
 0x136   : > { %v1560_v5 = vpack.c.bf16 %v1538_v28, %v1537_v32  ;;  %v2635_v55 = vunpack.i.h.bf16 %v2633_v25  ;;  %v2634_v27 = vunpack.i.l.bf16 %v2633_v25 }
 0x137   : > { %v1310_v16 = vsel %vm1287_vm5, %v1277_v7, %v2639_v41  ;;  %v1311_v40 = vsel %vm1287_vm5, %v1278_v61, %v2640_v54 }
 0x138   : > { %2135 = vmatmul.mubr.msk.bf16.gmra.mrb[16].mxu0 %vm1587_vm13, %v1560_v5  ;;  %v2648_v43 = vpop.permute.xlu1 %2647  ;;  %v1309_v6 = vsel %vm1287_vm5, %v1276_v58, %v2635_v55  ;;  %v1308_v11 = vsel %vm1287_vm5, %v1275_v22, %v2634_v27 }
 0x139   : > { %v2643_v4 = vpop.permute.xlu0 %2642  ;;  %v2650_v47 = vunpack.i.h.bf16 %v2648_v43  ;;  %v2649_v46 = vunpack.i.l.bf16 %v2648_v43 }
 0x13a   : > { %v2645_v57 = vunpack.i.h.bf16 %v2643_v4  ;;  %v2644_v13 = vunpack.i.l.bf16 %v2643_v4 }
 0x13b   : > { %v1343_v59 = vsel %vm1320_vm6, %v1310_v16, %v2649_v46  ;;  %v1344_v63 = vsel %vm1320_vm6, %v1311_v40, %v2650_v47 }
 0x13c   : > { %v3934_v23 = vpop.permute.xlu1 %2657  ;;  %v1341_v33 = vsel %vm1320_vm6, %v1308_v11, %v2644_v13  ;;  %v1342_v62 = vsel %vm1320_vm6, %v1309_v6, %v2645_v57 }
 0x13d   : > { %v2653_v49 = vpop.permute.xlu0 %2652  ;;  %v2660_v50 = vunpack.i.h.bf16 %v3934_v23  ;;  %v2659_v1 = vunpack.i.l.bf16 %v3934_v23 }
 0x13e   : > { %v2655_v30 = vunpack.i.h.bf16 %v2653_v49  ;;  %v2654_v34 = vunpack.i.l.bf16 %v2653_v49 }
 0x13f   : > { %v1376_v23 = vsel %vm1353_vm7, %v1343_v59, %v2659_v1  ;;  %v1377_v49 = vsel %vm1353_vm7, %v1344_v63, %v2660_v50  ;;  %v2889_v50 = vld [vmem:[%s3051_s5 + $0x140] sm:$0xff] }
 0x140   : > { %v3936_v2 = vpop.permute.xlu1 %2667  ;;  %v1374_v37 = vsel %vm1353_vm7, %v1341_v33, %v2654_v34  ;;  %v1375_v18 = vsel %vm1353_vm7, %v1342_v62, %v2655_v30 }
 0x141   : > { %v2663_v39 = vpop.permute.xlu0 %2662  ;;  %v2670_v15 = vunpack.i.h.bf16 %v3936_v2  ;;  %v2669_v35 = vunpack.i.l.bf16 %v3936_v2 }
 0x142   : > { %v2665_v21 = vunpack.i.h.bf16 %v2663_v39  ;;  %v2664_v8 = vunpack.i.l.bf16 %v2663_v39 }
 0x143   : > { %v1409_v52 = vsel %vm1386_vm8, %v1376_v23, %v2669_v35  ;;  %v1410_v42 = vsel %vm1386_vm8, %v1377_v49, %v2670_v15  ;;  %v2891_v15 = vld [vmem:[%s3051_s5 + $0x128] sm:$0xff] }
 0x144   : > { %v3940_v44 = vpop.permute.xlu1 %2677  ;;  %v1407_v38 = vsel %vm1386_vm8, %v1374_v37, %v2664_v8  ;;  %v1408_v24 = vsel %vm1386_vm8, %v1375_v18, %v2665_v21 }
 0x145   : > { %v2673_v56 = vpop.permute.xlu0 %2672  ;;  %v2680_v45 = vunpack.i.h.bf16 %v3940_v44  ;;  %v2679_v26 = vunpack.i.l.bf16 %v3940_v44 }
 0x146   : > { %v2675_v20 = vunpack.i.h.bf16 %v2673_v56  ;;  %v2674_v31 = vunpack.i.l.bf16 %v2673_v56 }
 0x147   : > { %v1442_v55 = vsel %vm1419_vm9, %v1409_v52, %v2679_v26  ;;  %v1443_v27 = vsel %vm1419_vm9, %v1410_v42, %v2680_v45 }
 0x148   : > { %v2688_v53 = vpop.permute.xlu1 %2687  ;;  %v1440_v29 = vsel %vm1419_vm9, %v1407_v38, %v2674_v31  ;;  %v1441_v28 = vsel %vm1419_vm9, %v1408_v24, %v2675_v20  ;;  %v2892_v38 = vld [vmem:[%s3051_s5 + $0x120] sm:$0xff] }
 0x149   : > { %v2683_v51 = vpop.permute.xlu0 %2682  ;;  %v2690_v25 = vunpack.i.h.bf16 %v2688_v53  ;;  %v2689_v5 = vunpack.i.l.bf16 %v2688_v53 }
 0x14a   : > { %v2685_v0 = vunpack.i.h.bf16 %v2683_v51  ;;  %v2684_v9 = vunpack.i.l.bf16 %v2683_v51 }
 0x14b   : > { %v1475_v44 = vsel %vm1452_vm10, %v1442_v55, %v2689_v5  ;;  %v1476_v56 = vsel %vm1452_vm10, %v1443_v27, %v2690_v25 }
 0x14c   : > { %v3968_v48 = vpop.permute.xlu1 %2697  ;;  %v1473_v43 = vsel %vm1452_vm10, %v1440_v29, %v2684_v9  ;;  %v1474_v4 = vsel %vm1452_vm10, %v1441_v28, %v2685_v0  ;;  %v2890_v0 = vld [vmem:[%s3051_s5 + $0x138] sm:$0xff] }
 0x14d   : > { %v2693_v19 = vpop.permute.xlu0 %2692  ;;  %v2700_v59 = vunpack.i.h.bf16 %v3968_v48  ;;  %v2699_v63 = vunpack.i.l.bf16 %v3968_v48 }
 0x14e   : > { %v2695_v32 = vunpack.i.h.bf16 %v2693_v19  ;;  %v2694_v60 = vunpack.i.l.bf16 %v2693_v19 }
 0x14f   : > { %v1280_v35 = vsel %vm1254_vm4, %v2891_v15, %v2700_v59  ;;  %v1279_v24 = vsel %vm1254_vm4, %v2892_v38, %v2699_v63 }
 0x150   : > { %v1506_v2 = vsel %vm1485_vm11, %v1473_v43, %v2694_v60  ;;  %v1507_v39 = vsel %vm1485_vm11, %v1474_v4, %v2695_v32  ;;  %v2708_v54 = vpop.permute.xlu1 %2707 }
 0x151   : > { %v1539_v17 = vsel %vm1518_vm12, %v1506_v2, 1.0  ;;  %v1540_v36 = vsel %vm1518_vm12, %v1507_v39, 1.0  ;;  %v2703_v41 = vpop.permute.xlu0 %2702  ;;  %v2710_v30 = vunpack.i.h.bf16 %v2708_v54  ;;  %v2709_v34 = vunpack.i.l.bf16 %v2708_v54 }
 0x152   : > { %v2705_v47 = vunpack.i.h.bf16 %v2703_v41  ;;  %v2704_v46 = vunpack.i.l.bf16 %v2703_v41  ;;  %v1561_v12 = vpack.c.bf16 %v1540_v36, %v1539_v17 }
 0x153   : > { %v1282_v1 = vsel %vm1254_vm4, %v2889_v50, %v2710_v30  ;;  %v1281_v9 = vsel %vm1254_vm4, %v2890_v0, %v2709_v34 }
 0x154   : > { %v1509_v61 = vsel %vm1485_vm11, %v1476_v56, %v2705_v47  ;;  %v1508_v10 = vsel %vm1485_vm11, %v1475_v44, %v2704_v46  ;;  %2138 = vmatprep.mubr.msk.bf16.mxu0 %vm1587_vm13, %v1561_v12  ;;  %v2718_v13 = vpop.permute.xlu1 %2717 }
 0x155   : > { %v1542_v7 = vsel %vm1518_vm12, %v1509_v61, 1.0  ;;  %v1541_v57 = vsel %vm1518_vm12, %v1508_v10, 1.0  ;;  %v2713_v14 = vpop.permute.xlu0 %2712  ;;  %v2720_v21 = vunpack.i.h.bf16 %v2718_v13  ;;  %v2719_v8 = vunpack.i.l.bf16 %v2718_v13 }
 0x156   : > { %v1562_v58 = vpack.c.bf16 %v1542_v7, %v1541_v57  ;;  %v2715_v53 = vunpack.i.h.bf16 %v2713_v14  ;;  %v2714_v51 = vunpack.i.l.bf16 %v2713_v14 }
 0x157   : > { %v1314_v45 = vsel %vm1287_vm5, %v1281_v9, %v2719_v8  ;;  %v1315_v26 = vsel %vm1287_vm5, %v1282_v1, %v2720_v21 }
 0x158   : > { %2139 = vmatmul.mubr.msk.bf16.gmra.mrb[20].mxu0 %vm1587_vm13, %v1562_v58  ;;  %v2728_v3 = vpop.permute.xlu1 %2727  ;;  %v1313_v48 = vsel %vm1287_vm5, %v1280_v35, %v2715_v53  ;;  %v1312_v19 = vsel %vm1287_vm5, %v1279_v24, %v2714_v51 }
 0x159   : > { %v2723_v22 = vpop.permute.xlu0 %2722  ;;  %v2730_v33 = vunpack.i.h.bf16 %v2728_v3  ;;  %v2729_v62 = vunpack.i.l.bf16 %v2728_v3 }
 0x15a   : > { %v2725_v37 = vunpack.i.h.bf16 %v2723_v22  ;;  %v2724_v18 = vunpack.i.l.bf16 %v2723_v22 }
 0x15b   : > { %v1347_v32 = vsel %vm1320_vm6, %v1314_v45, %v2729_v62  ;;  %v1348_v60 = vsel %vm1320_vm6, %v1315_v26, %v2730_v33 }
 0x15c   : > { %v3992_v16 = vpop.permute.xlu1 %2737  ;;  %v1345_v23 = vsel %vm1320_vm6, %v1312_v19, %v2724_v18  ;;  %v1346_v49 = vsel %vm1320_vm6, %v1313_v48, %v2725_v37 }
 0x15d   : > { %v2733_v40 = vpop.permute.xlu0 %2732  ;;  %v2740_v52 = vunpack.i.h.bf16 %v3992_v16  ;;  %v2739_v42 = vunpack.i.l.bf16 %v3992_v16 }
 0x15e   : > { %v2735_v29 = vunpack.i.h.bf16 %v2733_v40  ;;  %v2734_v28 = vunpack.i.l.bf16 %v2733_v40 }
 0x15f   : > { %v1380_v16 = vsel %vm1353_vm7, %v1347_v32, %v2739_v42  ;;  %v1381_v40 = vsel %vm1353_vm7, %v1348_v60, %v2740_v52 }
 0x160   : > { %v3994_v6 = vpop.permute.xlu1 %2747  ;;  %v1378_v54 = vsel %vm1353_vm7, %v1345_v23, %v2734_v28  ;;  %v1379_v41 = vsel %vm1353_vm7, %v1346_v49, %v2735_v29 }
 0x161   : > { %v2743_v11 = vpop.permute.xlu0 %2742  ;;  %v2750_v55 = vunpack.i.h.bf16 %v3994_v6  ;;  %v2749_v27 = vunpack.i.l.bf16 %v3994_v6 }
 0x162   : > { %v2745_v25 = vunpack.i.h.bf16 %v2743_v11  ;;  %v2744_v5 = vunpack.i.l.bf16 %v2743_v11 }
 0x163   : > { %v1413_v30 = vsel %vm1386_vm8, %v1380_v16, %v2749_v27  ;;  %v1414_v34 = vsel %vm1386_vm8, %v1381_v40, %v2750_v55  ;;  %v2896_v55 = vld [vmem:[%s3051_s5 + $0x170] sm:$0xff] }
 0x164   : > { %v3998_v20 = vpop.permute.xlu1 %2757  ;;  %v1411_v47 = vsel %vm1386_vm8, %v1378_v54, %v2744_v5  ;;  %v1412_v46 = vsel %vm1386_vm8, %v1379_v41, %v2745_v25  ;;  %v2895_v54 = vld [vmem:[%s3051_s5 + $0x150] sm:$0xff] }
 0x165   : > { %v2753_v31 = vpop.permute.xlu0 %2752  ;;  %v2760_v44 = vunpack.i.h.bf16 %v3998_v20  ;;  %v2759_v56 = vunpack.i.l.bf16 %v3998_v20 }
 0x166   : > { %v2755_v2 = vunpack.i.h.bf16 %v2753_v31  ;;  %v2754_v39 = vunpack.i.l.bf16 %v2753_v31 }
 0x167   : > { %v1446_v53 = vsel %vm1419_vm9, %v1413_v30, %v2759_v56  ;;  %v1447_v51 = vsel %vm1419_vm9, %v1414_v34, %v2760_v44 }
 0x168   : > { %v2768_v43 = vpop.permute.xlu1 %2767  ;;  %v1444_v10 = vsel %vm1419_vm9, %v1411_v47, %v2754_v39  ;;  %v1445_v7 = vsel %vm1419_vm9, %v1412_v46, %v2755_v2  ;;  %v2893_v39 = vld [vmem:[%s3051_s5 + $0x168] sm:$0xff] }
 0x169   : > { %v2763_v4 = vpop.permute.xlu0 %2762  ;;  %v2770_v14 = vunpack.i.h.bf16 %v2768_v43  ;;  %v2769_v58 = vunpack.i.l.bf16 %v2768_v43 }
 0x16a   : > { %v2765_v17 = vunpack.i.h.bf16 %v2763_v4  ;;  %v2764_v36 = vunpack.i.l.bf16 %v2763_v4 }
 0x16b   : > { %v1479_v20 = vsel %vm1452_vm10, %v1446_v53, %v2769_v58  ;;  %v1480_v31 = vsel %vm1452_vm10, %v1447_v51, %v2770_v14 }
 0x16c   : > { %v2778_v12 = vpop.permute.xlu1 %2777  ;;  %v1477_v3 = vsel %vm1452_vm10, %v1444_v10, %v2764_v36  ;;  %v1478_v22 = vsel %vm1452_vm10, %v1445_v7, %v2765_v17  ;;  %v2894_v17 = vld [vmem:[%s3051_s5 + $0x158] sm:$0xff]  ;;  %s2081_s5 = sshll.u32 %s3019_s19, 4  ;;  %s2897_s19 = scalar_lea.vmem %s4124_s7, 16 }
 0x16d   : > { %v2773_v61 = vpop.permute.xlu0 %2772  ;;  %v2780_v19 = vunpack.i.h.bf16 %v2778_v12  ;;  %v2779_v29 = vunpack.i.l.bf16 %v2778_v12  ;;  %s4122_s10 = scalar_lea.hbm %s4168_s4, %s2081_s5  ;;  %p2898_p11 = scmp.ne.s32.totalorder %s4124_s7, %s2897_s19 }
 0x16e   : > { %v2775_v57 = vunpack.i.h.bf16 %v2773_v61  ;;  %v2774_v13 = vunpack.i.l.bf16 %v2773_v61  ;;  %p2905_p1 = scmp.lt.s32.totalorder %s2903_s14, %s2897_s19 }
 0x16f   : > { %v1284_v36 = vsel %vm1254_vm4, %v2894_v17, %v2780_v19  ;;  %v1283_v41 = vsel %vm1254_vm4, %v2895_v54, %v2779_v29  ;;  %p2899_p12 = pnand %p2898_p11, %p3036_p5 }
 0x170   : > { %v1510_v6 = vsel %vm1485_vm11, %v1477_v3, %v2774_v13  ;;  %v1511_v11 = vsel %vm1485_vm11, %v1478_v22, %v2775_v57  ;;  %v2788_v21 = vpop.permute.xlu1 %2787  ;;  %p2906_p2 = por %p2905_p1, %p2904_p0 }
 0x171   : > { %v1543_v59 = vsel %vm1518_vm12, %v1510_v6, 1.0  ;;  %v1544_v63 = vsel %vm1518_vm12, %v1511_v11, 1.0  ;;  %v2783_v8 = vpop.permute.xlu0 %2782  ;;  %v2789_v48 = vunpack.i.l.bf16 %v2788_v21  ;;  %v2790_v28 = vunpack.i.h.bf16 %v2788_v21  ;;  %p2900_p13 = pneg %p2899_p12 }
 0x172   : > { %v2785_v33 = vunpack.i.h.bf16 %v2783_v8  ;;  %v2784_v62 = vunpack.i.l.bf16 %v2783_v8  ;;  %v1563_v50 = vpack.c.bf16 %v1544_v63, %v1543_v59 }
 0x173   : > { %v1285_v52 = vsel %vm1254_vm4, %v2893_v39, %v2789_v48  ;;  %v1286_v27 = vsel %vm1254_vm4, %v2896_v55, %v2790_v28  ;;  %p2907_p3 = pnand %p2906_p2, %p2900_p13 }
 0x174   : > { %v1513_v1 = vsel %vm1485_vm11, %v1480_v31, %v2785_v33  ;;  %v1512_v0 = vsel %vm1485_vm11, %v1479_v20, %v2784_v62  ;;  %2142 = vmatprep.mubr.msk.bf16.mxu0 %vm1587_vm13, %v1563_v50  ;;  %v2798_v18 = vpop.permute.xlu1 %2797 }
 0x175   : > { %v1546_v9 = vsel %vm1518_vm12, %v1513_v1, 1.0  ;;  %v1545_v37 = vsel %vm1518_vm12, %v1512_v0, 1.0  ;;  %v2793_v15 = vpop.permute.xlu0 %2792  ;;  %v2799_v32 = vunpack.i.l.bf16 %v2798_v18  ;;  %v2800_v60 = vunpack.i.h.bf16 %v2798_v18 }
 0x176   : > { %v1564_v35 = vpack.c.bf16 %v1546_v9, %v1545_v37  ;;  %v2795_v25 = vunpack.i.h.bf16 %v2793_v15  ;;  %v2794_v5 = vunpack.i.l.bf16 %v2793_v15 }
 0x177   : > { %v1318_v47 = vsel %vm1287_vm5, %v1285_v52, %v2799_v32  ;;  %v1319_v46 = vsel %vm1287_vm5, %v1286_v27, %v2800_v60 }
 0x178   : > { %2143 = vmatmul.mubr.msk.bf16.gmra.mrb[24].mxu0 %vm1587_vm13, %v1564_v35  ;;  %v2808_v38 = vpop.permute.xlu1 %2807  ;;  %v1317_v44 = vsel %vm1287_vm5, %v1284_v36, %v2795_v25  ;;  %v1316_v56 = vsel %vm1287_vm5, %v1283_v41, %v2794_v5 }
 0x179   : > { %v2803_v24 = vpop.permute.xlu0 %2802  ;;  %v2810_v23 = vunpack.i.h.bf16 %v2808_v38  ;;  %v2809_v49 = vunpack.i.l.bf16 %v2808_v38 }
 0x17a   : > { %v2804_v2 = vunpack.i.l.bf16 %v2803_v24  ;;  %v2805_v42 = vunpack.i.h.bf16 %v2803_v24 }
 0x17b   : > { %v1351_v7 = vsel %vm1320_vm6, %v1318_v47, %v2809_v49  ;;  %v1352_v57 = vsel %vm1320_vm6, %v1319_v46, %v2810_v23 }
 0x17c   : > { %v2818_v45 = vpop.permute.xlu1 %2817  ;;  %v1349_v13 = vsel %vm1320_vm6, %v1316_v56, %v2804_v2  ;;  %v1350_v58 = vsel %vm1320_vm6, %v1317_v44, %v2805_v42 }
 0x17d   : > { %v2813_v26 = vpop.permute.xlu0 %2812  ;;  %v2819_v12 = vunpack.i.l.bf16 %v2818_v45  ;;  %v2820_v14 = vunpack.i.h.bf16 %v2818_v45 }
 0x17e   : > { %v2815_v3 = vunpack.i.h.bf16 %v2813_v26  ;;  %v2814_v22 = vunpack.i.l.bf16 %v2813_v26 }
 0x17f   : > { %v1384_v34 = vsel %vm1353_vm7, %v1351_v7, %v2819_v12  ;;  %v1385_v51 = vsel %vm1353_vm7, %v1352_v57, %v2820_v14 }
 0x180   : > { %v2828_v43 = vpop.permute.xlu1 %2827  ;;  %v1382_v31 = vsel %vm1353_vm7, %v1349_v13, %v2814_v22  ;;  %v1383_v50 = vsel %vm1353_vm7, %v1350_v58, %v2815_v3 }
 0x181   : > { %v2823_v4 = vpop.permute.xlu0 %2822  ;;  %v2829_v16 = vunpack.i.l.bf16 %v2828_v43  ;;  %v2830_v40 = vunpack.i.h.bf16 %v2828_v43 }
 0x182   : > { %v2825_v6 = vunpack.i.h.bf16 %v2823_v4  ;;  %v2824_v11 = vunpack.i.l.bf16 %v2823_v4 }
 0x183   : > { %v1417_v1 = vsel %vm1386_vm8, %v1384_v34, %v2829_v16  ;;  %v1418_v9 = vsel %vm1386_vm8, %v1385_v51, %v2830_v40 }
 0x184   : > { %v2838_v61 = vpop.permute.xlu1 %2837  ;;  %v1415_v37 = vsel %vm1386_vm8, %v1382_v31, %v2824_v11  ;;  %v1416_v18 = vsel %vm1386_vm8, %v1383_v50, %v2825_v6  ;;  %v2864_v50 = vld [vmem:[%s4166_s2] sm:$0xff]  }
 0x185   : > { %v2833_v10 = vpop.permute.xlu0 %2832  ;;  %v2839_v30 = vunpack.i.l.bf16 %v2838_v61  ;;  %v2840_v59 = vunpack.i.h.bf16 %v2838_v61 }
 0x186   : > { %v2835_v63 = vunpack.i.h.bf16 %v2833_v10  ;;  %v2834_v21 = vunpack.i.l.bf16 %v2833_v10 }
 0x187   : > { %v1450_v15 = vsel %vm1419_vm9, %v1417_v1, %v2839_v30  ;;  %v1451_v38 = vsel %vm1419_vm9, %v1418_v9, %v2840_v59  ;;  %v2970_v1 = vmov 0.0   ;;  %v2865_v9 = vld [vmem:[%s4166_s2 + $0x8] sm:$0xff]  }
 0x188   : > { %v2848_v8 = vpop.permute.xlu1 %2847  ;;  %v1448_v24 = vsel %vm1419_vm9, %v1415_v37, %v2834_v21  ;;  %v1449_v45 = vsel %vm1419_vm9, %v1416_v18, %v2835_v63  ;;  %2150 = vmatprep.subr.bf16.mxu1 %v2970_v1  ;;  %v2866_v18 = vld [vmem:[%s4166_s2 + $0x10] sm:$0xff]   ;;  %2166 = vmatprep.mubr.msk.bf16.mxu1 %vm2971_vm14, %v2970_v1 }
 0x189   : > { %v2843_v53 = vpop.permute.xlu0 %2842  ;;  %v2850_v33 = vunpack.i.h.bf16 %v2848_v8  ;;  %v2849_v62 = vunpack.i.l.bf16 %v2848_v8  ;;  %2151 = vmatpush3.bf16.msra.mxu1 %v2864_v50 }
 0x18a   : > { %v2844_v20 = vunpack.i.l.bf16 %v2843_v53  ;;  %v2845_v0 = vunpack.i.h.bf16 %v2843_v53  ;;  %2152 = vmatprep.subr.bf16.mxu1 %v2970_v1 }
 0x18b   : > { %v2120_v35 = vpop.f32.mrb[0].mxu0  ;;  %v1483_v26 = vsel %vm1452_vm10, %v1450_v15, %v2849_v62  ;;  %v1484_v29 = vsel %vm1452_vm10, %v1451_v38, %v2850_v33 }
 0x18c   : > { %v1677_v48 = vpop.f32.mrb[1].mxu0  ;;  %v2858_v19 = vpop.permute.xlu1 %2857  ;;  %v1481_v28 = vsel %vm1452_vm10, %v1448_v24, %v2844_v20  ;;  %v1482_v43 = vsel %vm1452_vm10, %v1449_v45, %v2845_v0  ;;  %v1806_v4 = vmax.f32 %v2120_v35, 0.0 }
 0x18d   : > { %v2860_v32 = vunpack.i.h.bf16 %v2858_v19  ;;  %v2859_v60 = vunpack.i.l.bf16 %v2858_v19  ;;  %v2853_v25 = vpop.permute.xlu0 %2852  ;;  %v2121_v5 = vpop.f32.mrb[2].mxu0  ;;  %v1804_v39 = vmax.f32 %v1677_v48, 0.0  ;;  %2153 = vmatpush3.bf16.msra.mxu1 %v2865_v9  ;;  %v2867_v48 = vld [vmem:[%s4166_s2 + $0x18] sm:$0xff]  }
 0x18e   : > { %v2855_v23 = vunpack.i.h.bf16 %v2853_v25  ;;  %v2854_v49 = vunpack.i.l.bf16 %v2853_v25  ;;  %v1680_v2 = vpop.f32.mrb[3].mxu0  ;;  %v1807_v12 = vmax.f32 %v2121_v5, 0.0  ;;  %2154 = vmatprep.subr.bf16.mxu1 %v2970_v1  ;;  %v2869_v5 = vld [vmem:[%s4166_s2 + $0x28] sm:$0xff]  }
 0x18f   : > { %v1516_v52 = vsel %vm1485_vm11, %v1483_v26, %v2859_v60  ;;  %v1517_v42 = vsel %vm1485_vm11, %v1484_v29, %v2860_v32  ;;  %v1805_v17 = vmax.f32 %v1680_v2, 0.0  ;;  %v2868_v60 = vld [vmem:[%s4166_s2 + $0x20] sm:$0xff]  }
 0x190   : > { %v1549_v36 = vsel %vm1518_vm12, %v1516_v52, 1.0  ;;  %v1550_v54 = vsel %vm1518_vm12, %v1517_v42, 1.0  ;;  %v1514_v41 = vsel %vm1485_vm11, %v1481_v28, %v2854_v49  ;;  %v1515_v55 = vsel %vm1485_vm11, %v1482_v43, %v2855_v23  ;;  %v2870_v43 = vld [vmem:[%s4166_s2 + $0x30] sm:$0xff]  }
 0x191   : > { %v1566_v27 = vpack.c.bf16 %v1550_v54, %v1549_v36  ;;  %v1547_v47 = vsel %vm1518_vm12, %v1514_v41, 1.0  ;;  %v1548_v46 = vsel %vm1518_vm12, %v1515_v55, 1.0  ;;  %v1836_v44 = vadd.f32 %v1805_v17, %v1804_v39  ;;  %2155 = vmatpush3.bf16.msra.mxu1 %v2866_v18 }
 0x192   : > { %v1565_v56 = vpack.c.bf16 %v1548_v46, %v1547_v47  ;;  %2156 = vmatprep.subr.bf16.mxu1 %v2970_v1 }
 0x193   : > { %v1837_v61 = vadd.f32 %v1836_v44, %v1806_v4  ;;  %v2871_v4 = vld [vmem:[%s4166_s2 + $0x38] sm:$0xff]  }
 0x194   : > { %2146 = vmatprep.mubr.msk.bf16.mxu0 %vm1587_vm13, %v1565_v56 }
 0x195   : > { %2147 = vmatmul.mubr.msk.bf16.gmra.mrb[28].mxu0 %vm1587_vm13, %v1566_v27  ;;  %v1838_v10 = vadd.f32 %v1837_v61, %v1807_v12  ;;  %2157 = vmatpush3.bf16.msra.mxu1 %v2867_v48 }
 0x196   : > { %2158 = vmatprep.subr.bf16.mxu1 %v2970_v1 }
 0x199   : > { %2159 = vmatpush3.bf16.msra.mxu1 %v2868_v60 }
 0x19a   : > { %2160 = vmatprep.subr.bf16.mxu1 %v2970_v1 }
 0x19d   : > { %2161 = vmatpush3.bf16.msra.mxu1 %v2869_v5 }
 0x19e   : > { %2162 = vmatprep.subr.bf16.mxu1 %v2970_v1 }
 0x1a1   : > { %2163 = vmatpush3.bf16.msra.mxu1 %v2870_v43 }
 0x1a2   : > { %2164 = vmatprep.subr.bf16.mxu1 %v2970_v1 }
 0x1a5   : > { %2165 = vmatpush3.bf16.msra.mxu1 %v2871_v4 }
 0x1ab   : > { %v2124_v7 = vpop.f32.mrb[4].mxu0 }
 0x1ac   : > { %v1693_v57 = vpop.f32.mrb[5].mxu0  ;;  %v1810_v16 = vmax.f32 %v2124_v7, 0.0 }
 0x1ad   : > { %v1808_v13 = vmax.f32 %v1693_v57, 0.0  ;;  %v2125_v14 = vpop.f32.mrb[6].mxu0 }
 0x1ae   : > { %v1696_v58 = vpop.f32.mrb[7].mxu0  ;;  %v1811_v6 = vmax.f32 %v2125_v14, 0.0 }
 0x1af   : > { %v1839_v3 = vadd.f32 %v1838_v10, %v1808_v13  ;;  %v1809_v22 = vmax.f32 %v1696_v58, 0.0 }
 0x1b1   : > { %v1840_v40 = vadd.f32 %v1839_v3, %v1809_v22 }
 0x1b3   : > { %v1841_v11 = vadd.f32 %v1840_v40, %v1810_v16 }
 0x1b5   : > { %v1842_v30 = vadd.f32 %v1841_v11, %v1811_v6 }
 0x1cb   : > { %v2128_v34 = vpop.f32.mrb[8].mxu0 }
 0x1cc   : > { %v1709_v59 = vpop.f32.mrb[9].mxu0  ;;  %v1814_v33 = vmax.f32 %v2128_v34, 0.0 }
 0x1cd   : > { %v1812_v63 = vmax.f32 %v1709_v59, 0.0  ;;  %v2129_v21 = vpop.f32.mrb[10].mxu0 }
 0x1ce   : > { %v1712_v8 = vpop.f32.mrb[11].mxu0  ;;  %v1815_v20 = vmax.f32 %v2129_v21, 0.0 }
 0x1cf   : > { %v1843_v53 = vadd.f32 %v1842_v30, %v1812_v63  ;;  %v1813_v51 = vmax.f32 %v1712_v8, 0.0 }
 0x1d1   : > { %v1844_v62 = vadd.f32 %v1843_v53, %v1813_v51 }
 0x1d3   : > { %v1845_v31 = vadd.f32 %v1844_v62, %v1814_v33 }
 0x1d5   : > { %v1846_v0 = vadd.f32 %v1845_v31, %v1815_v20 }
 0x1eb   : > { %v2132_v37 = vpop.f32.mrb[12].mxu0 }
 0x1ec   : > { %v1725_v15 = vpop.f32.mrb[13].mxu0  ;;  %v1818_v19 = vmax.f32 %v2132_v37, 0.0 }
 0x1ed   : > { %v1816_v35 = vmax.f32 %v1725_v15, 0.0  ;;  %v2133_v38 = vpop.f32.mrb[14].mxu0 }
 0x1ee   : > { %v1728_v24 = vpop.f32.mrb[15].mxu0  ;;  %v1819_v28 = vmax.f32 %v2133_v38, 0.0 }
 0x1ef   : > { %v1847_v45 = vadd.f32 %v1846_v0, %v1816_v35  ;;  %v1817_v26 = vmax.f32 %v1728_v24, 0.0 }
 0x1f1   : > { %v1848_v29 = vadd.f32 %v1847_v45, %v1817_v26 }
 0x1f3   : > { %v1849_v32 = vadd.f32 %v1848_v29, %v1818_v19  ;;  %v1891_v29 = vld [vmem:[%s4167_s3] sm:$0x1] }
 0x1f5   : > { %v1850_v25 = vadd.f32 %v1849_v32, %v1819_v28 }
 0x20b   : > { %v2136_v23 = vpop.f32.mrb[16].mxu0 }
 0x20c   : > { %v1741_v49 = vpop.f32.mrb[17].mxu0  ;;  %v1822_v36 = vmax.f32 %v2136_v23, 0.0 }
 0x20d   : > { %v1820_v2 = vmax.f32 %v1741_v49, 0.0  ;;  %v2137_v39 = vpop.f32.mrb[18].mxu0 }
 0x20e   : > { %v1744_v52 = vpop.f32.mrb[19].mxu0  ;;  %v1823_v41 = vmax.f32 %v2137_v39, 0.0 }
 0x20f   : > { %v1851_v42 = vadd.f32 %v1850_v25, %v1820_v2  ;;  %v1821_v17 = vmax.f32 %v1744_v52, 0.0 }
 0x211   : > { %v1852_v54 = vadd.f32 %v1851_v42, %v1821_v17 }
 0x213   : > { %v1853_v55 = vadd.f32 %v1852_v54, %v1822_v36 }
 0x215   : > { %v1854_v27 = vadd.f32 %v1853_v55, %v1823_v41 }
 0x22b   : > { %v2140_v47 = vpop.f32.mrb[20].mxu0 }
 0x22c   : > { %v1757_v46 = vpop.f32.mrb[21].mxu0  ;;  %v1826_v7 = vmax.f32 %v2140_v47, 0.0 }
 0x22d   : > { %v1824_v44 = vmax.f32 %v1757_v46, 0.0  ;;  %v2141_v56 = vpop.f32.mrb[22].mxu0 }
 0x22e   : > { %v1760_v12 = vpop.f32.mrb[23].mxu0  ;;  %v1827_v13 = vmax.f32 %v2141_v56, 0.0 }
 0x22f   : > { %v1855_v61 = vadd.f32 %v1854_v27, %v1824_v44  ;;  %v1825_v10 = vmax.f32 %v1760_v12, 0.0 }
 0x231   : > { %v1856_v57 = vadd.f32 %v1855_v61, %v1825_v10 }
 0x233   : > { %v1857_v14 = vadd.f32 %v1856_v57, %v1826_v7 }
 0x235   : > { %v1858_v58 = vadd.f32 %v1857_v14, %v1827_v13 }
 0x24b   : > { %v2144_v3 = vpop.f32.mrb[24].mxu0 }
 0x24c   : > { %v1773_v22 = vpop.f32.mrb[25].mxu0  ;;  %v1830_v34 = vmax.f32 %v2144_v3, 0.0 }
 0x24d   : > { %v1828_v16 = vmax.f32 %v1773_v22, 0.0  ;;  %v2145_v40 = vpop.f32.mrb[26].mxu0 }
 0x24e   : > { %v1776_v6 = vpop.f32.mrb[27].mxu0  ;;  %v1831_v63 = vmax.f32 %v2145_v40, 0.0 }
 0x24f   : > { %v1859_v11 = vadd.f32 %v1858_v58, %v1828_v16  ;;  %v1829_v30 = vmax.f32 %v1776_v6, 0.0 }
 0x251   : > { %v1860_v59 = vadd.f32 %v1859_v11, %v1829_v30 }
 0x253   : > { %v1861_v21 = vadd.f32 %v1860_v59, %v1830_v34 }
 0x255   : > { %v1862_v8 = vadd.f32 %v1861_v21, %v1831_v63 }
 0x268   : > { %v2148_v53 = vpop.f32.mrb[28].mxu0 }
 0x269   : > { %v1789_v51 = vpop.f32.mrb[29].mxu0  ;;  %v1834_v1 = vmax.f32 %v2148_v53, 0.0 }
 0x26a   : > { %v1832_v33 = vmax.f32 %v1789_v51, 0.0  ;;  %v2149_v62 = vpop.f32.mrb[30].mxu0 }
 0x26b   : > { %v1792_v20 = vpop.f32.mrb[31].mxu0  ;;  %v1835_v9 = vmax.f32 %v2149_v62, 0.0 }
 0x26c   : > { %v1863_v31 = vadd.f32 %v1862_v8, %v1832_v33  ;;  %v1833_v50 = vmax.f32 %v1792_v20, 0.0 }
 0x26e   : > { %v1864_v0 = vadd.f32 %v1863_v31, %v1833_v50 }
 0x270   : > { %v1865_v37 = vadd.f32 %v1864_v0, %v1834_v1 }
 0x272   : > { %v1866_v18 = vadd.f32 %v1865_v37, %v1835_v9 }
 0x274   : > { %v1867_v15 = vrot.slane %v1866_v18, 4 }
 0x276   : > { %v1868_v35 = vadd.f32 %v1867_v15, %v1866_v18 }
 0x278   : > { %v1869_v38 = vrot.slane %v1868_v35, 2 }
 0x27a   : > { %v1870_v24 = vadd.f32 %v1869_v38, %v1868_v35 }
 0x27c   : > { %v1871_v45 = vrot.slane %v1870_v24, 1 }
 0x27e   : > { %v1872_v26 = vadd.f32 %v1871_v45, %v1870_v24 }
 0x280   : > { %v1873_v48 = vmul.f32 0.00390625, %v1872_v26 }
 0x282   : > { %v1874_v19 = vpack.c.bf16 %v1873_v48, %v1873_v48 }
 0x284   : > { %2167 = vmatmul.mubr.bf16.vlgmr.msra.gmra.mrb[0].mxu1 %v1874_v19 }
 0x357   : > { %v1974_v28 = vpop.f32.mrb[0].mxu1 }
 0x358   : > { %v1975_v32 = vadd.f32 %v1974_v28, %v1891_v29  ;;  %v2168_v60 = vpop.f32.mrb[1].mxu1 }
 0x359   : > { %v1977_v25 = vpop.f32.mrb[2].mxu1 }
 0x35a   : > { %1980 = vst [vmem:[%s189_s6] sm:$0x1] %v1975_v32  ;;  %v2169_v5 = vpop.f32.mrb[3].mxu1 }
 0x35b   : > { %2910 = shalt.err (!%p2907_p3)
}
 0x35c   : > { %s2911_s20 = scalar_lea.hbm %s4122_s10, 16  ;;  %s2915_s27 = scalar_lea.hbm %s4168_s4, 32 }
 0x35d   : > { %p2912_p4 = scmp.ne.s32.totalorder %s4122_s10, %s2911_s20  ;;  %p2916_p9 = scmp.lt.u32.totalorder %s4122_s10, %s4168_s4 }
 0x35e   : > { %p2917_p10 = scmp.lt.u32.totalorder %s2915_s27, %s2911_s20  ;;  %p2919_p12 = scmp.lt.u32.totalorder %s2911_s20, %s4122_s10 }
 0x35f   : > { %p2913_p7 = pnand %p2912_p4, %p3036_p5 }
 0x360   : > { %p2918_p11 = por %p2917_p10, %p2916_p9 }
 0x361   : > { %p2914_p8 = pneg %p2913_p7 }
 0x362   : > { %p2920_p13 = por %p2919_p12, %p2918_p11 }
 0x364   : > { %p2921_p0 = pnand %p2920_p13, %p2914_p8 }
 0x366   : > { %2924 = shalt.err (!%p2921_p0)
}
 0x367   : > { %2171 = dma.vmem_to_hbm [thread:$0]  (%p3036_p5), %s4124_s7, 16, %s4122_s10, %s1982_s11  }
 0x368 PF: > { %p2177_p1 = scmp.ge.s32.totalorder %s2959_s18, 2  ;;  %s2006_s30 = sand.u32 1, %s2947_s15  }
 0x369   : > { %s2007_s5 = scalar_lea.sflag [#allocation3], %s2006_s30 }
 0x36a   : > { %p2174_p2 = pnand %p2177_p1, %p3040_p6 }
 0x36c   : > { %2942 = dma.done.wait (!%p2174_p2), %s2007_s5, 16  }
 0x36d   : > { %2944 = vsyncadd (!%p2174_p2), %s2007_s5, 4294967280  ;;  %p14_p3 = scmp.ge.s32.totalorder %s3023_s21, 4   ;;  %s4171_s15 = smov %s2951_s16 }
 0x36e   : > { %s4172_s16 = smov %s2955_s17  ;;  %s4173_s17 = smov %s3034_s24 }
 0x36f   : > { %s4174_s18 = smov %s3023_s21  ;;  %16 = sbr.rel (!%p14_p3) target bundleno = 3 (0x3), region = 71 }
 0x376   :  { %2011 = vsyncpa [#allocation3], 1 }
 0x377   :  { %2013 = vsyncpa [#allocation3 + $0x1], 1 }

</bundles_post_ra>
